<compile_context>
chip_gen: v6e
topology: v6e:2x2x1
jax: 0.10.0
libtpu: 0.0.40
codegen_flags: <defaults>
</compile_context>

<pallas_src>
import jax
import jax.numpy as jnp
from jax.experimental import pallas as pl
from jax.experimental.pallas import tpu as pltpu


H1 = 400      # layer-1 width per head (PyTorch model)
H1P = 512     # padded layer-1 width per head (lane-aligned slice boundary)
H2 = 300      # layer-2 width per head
H2P = 384     # padded layer-2 width (3 x 128 lanes, no masked vregs)


# --------------------------------------------------------------------------
# Kernel
# --------------------------------------------------------------------------
def critic_kernel(state_ref, action_ref,
                  w14s_ref, w14a_ref, b14_ref,
                  w2_ref, b2_ref, w5_ref, b5_ref,
                  w36_ref, b36_ref,
                  out_ref):
    """Fused twin-Q MLP for one batch tile."""
    cdt = w14s_ref.dtype                        # MXU operand dtype (bf16/f32)
    s = state_ref[...].astype(cdt)
    a = action_ref[...].astype(cdt)

    # ---- fused layer 1 of both heads: (bm, 2*H1P); the torch.cat([state,
    # action]) is absorbed as two dots on the split weight, added together.
    h14 = (jnp.dot(s, w14s_ref[...], preferred_element_type=jnp.float32)
           + jnp.dot(a, w14a_ref[...], preferred_element_type=jnp.float32)
           + b14_ref[...])
    h14 = jnp.maximum(h14, 0.0)

    # lane-aligned split into the two heads (padding columns are exactly zero)
    h = h14[:, :H1P].astype(cdt)                # head-1 activations (bm, 512)
    g = h14[:, H1P:].astype(cdt)                # head-2 activations (bm, 512)

    # ---- layer 2: K zero-padded 400->512, N zero-padded 300->384 (exact)
    h2 = jnp.maximum(
        jnp.dot(h, w2_ref[...], preferred_element_type=jnp.float32)
        + b2_ref[...], 0.0)
    g2 = jnp.maximum(
        jnp.dot(g, w5_ref[...], preferred_element_type=jnp.float32)
        + b5_ref[...], 0.0)

    # ---- layer 3 (300 -> 1) as elementwise-mul + lane reduction (VPU/XLU);
    # padded lanes contribute zero because w36's pad columns are zero.
    q1 = jnp.sum(h2 * w36_ref[0:1, :], axis=1, keepdims=True) + b36_ref[:, 0:1]
    q2 = jnp.sum(g2 * w36_ref[1:2, :], axis=1, keepdims=True) + b36_ref[:, 1:2]

    out_ref[...] = jnp.concatenate([q1, q2], axis=1)   # single packed store


# --------------------------------------------------------------------------
# Parameter init / one-time packing (hoisted out of the forward path)
# --------------------------------------------------------------------------
def init_critic_params(key, state_dim, action_dim, dtype=jnp.float32):
    """Synthetic init matching the nn.Module's Linear layers.

    Weights are stored pre-transposed (in_features, out_features); biases as
    (1, out_features).
    """
    d_in = state_dim + action_dim
    dims = [(d_in, H1), (H1, H2), (H2, 1),    # head 1: l1, l2, l3
            (d_in, H1), (H1, H2), (H2, 1)]    # head 2: l4, l5, l6
    params = []
    for i, (fin, fout) in enumerate(dims):
        kw, kb, key = jax.random.split(jax.random.fold_in(key, i), 3)
        bound = 1.0 / jnp.sqrt(fin)
        w = jax.random.uniform(kw, (fin, fout), dtype, minval=-bound, maxval=bound)
        b = jax.random.uniform(kb, (1, fout), dtype, minval=-bound, maxval=bound)
        params += [w, b]
    return tuple(params)


def pack_critic_params(params, state_dim, compute_dtype=jnp.bfloat16):
    """Pack per-layer params into the fused/padded kernel layout.

    Call ONCE (at init / param update), not per forward step.
    """
    w1, b1, w2, b2, w3, b3, w4, b4, w5, b5, w6, b6 = params

    def pad_cols(x, to):
        return jnp.pad(x, ((0, 0), (0, to - x.shape[1])))

    # fused first layer of both heads, each head padded 400 -> 512 columns
    w14 = jnp.concatenate([pad_cols(w1, H1P), pad_cols(w4, H1P)], axis=1)  # (D,1024)
    b14 = jnp.concatenate([pad_cols(b1, H1P), pad_cols(b4, H1P)], axis=1)  # (1,1024)
    w14_s, w14_a = w14[:state_dim], w14[state_dim:]

    # second layers: K zero-padded 400->512, N zero-padded 300->384
    w2p = jnp.pad(w2, ((0, H1P - H1), (0, H2P - H2)))                      # (512,384)
    w5p = jnp.pad(w5, ((0, H1P - H1), (0, H2P - H2)))                      # (512,384)
    b2p = pad_cols(b2, H2P)                                                # (1,384)
    b5p = pad_cols(b5, H2P)                                                # (1,384)

    # final 1-wide layers packed as rows (used via mul + reduce, kept in f32)
    w36 = jnp.concatenate([pad_cols(w3.T, H2P), pad_cols(w6.T, H2P)], axis=0)  # (2,384)
    b36 = jnp.concatenate([b3, b6], axis=1)                                    # (1,2)

    cd = compute_dtype
    return (w14_s.astype(cd), w14_a.astype(cd), b14.astype(jnp.float32),
            w2p.astype(cd), b2p.astype(jnp.float32),
            w5p.astype(cd), b5p.astype(jnp.float32),
            w36.astype(jnp.float32), b36.astype(jnp.float32))


# --------------------------------------------------------------------------
# Batch-tile selection
# --------------------------------------------------------------------------
def _round_up(x, m):
    return (x + m - 1) // m * m


def _cdiv(a, b):
    return (a + b - 1) // b


def _default_bm_cap():
    """Bigger single tile on 128-MiB-VMEM chips (v5e/v6e); 1024 on v7x."""
    try:
        vmem = pltpu.get_tpu_info().vmem_capacity_bytes
        return 2048 if vmem >= 96 * 1024 * 1024 else 1024
    except Exception:
        return 1024


def _pick_batch_tile(B, bm_cap):
    bm_cap = max(8, _round_up(bm_cap, 8))
    B8 = _round_up(B, 8)
    if B8 <= bm_cap:
        return B8, B8                       # one tile: zero per-step overhead
    steps = _cdiv(B8, bm_cap)
    if steps % 2:                           # even step count -> both v7x TCs busy
        steps += 1
    bm = _round_up(_cdiv(B8, steps), 8)
    return bm, bm * steps


# --------------------------------------------------------------------------
# Forward wrapper
# --------------------------------------------------------------------------
def critic_forward(state, action, packed, *, bm_cap=None):
    """Pallas forward pass. `packed` = pack_critic_params(...) (built once).

    Returns (q1, q2), each of shape (batch, 1) in float32.
    """
    B, state_dim = state.shape
    _, action_dim = action.shape
    d_in = state_dim + action_dim

    if bm_cap is None:
        bm_cap = _default_bm_cap()
    bm, B_pad = _pick_batch_tile(B, bm_cap)
    if B_pad != B:
        pad = ((0, B_pad - B), (0, 0))
        state = jnp.pad(state, pad)
        action = jnp.pad(action, pad)

    grid = (B_pad // bm,)

    def const_spec(p):
        # Constant index_map: block fetched once; kept default-buffered for
        # compatibility (weights are <1 MB bf16, negligible vs. 32 MiB budget).
        return pl.BlockSpec(p.shape, lambda i: (0, 0))

    in_specs = [pl.BlockSpec((bm, state_dim), lambda i: (i, 0)),
                pl.BlockSpec((bm, action_dim), lambda i: (i, 0))]
    in_specs += [const_spec(p) for p in packed]

    out_specs = pl.BlockSpec((bm, 2), lambda i: (i, 0))
    out_shape = jax.ShapeDtypeStruct((B_pad, 2), jnp.float32)

    # Advisory cost for XLA's scheduler around the custom call.
    flops = 2 * B_pad * (d_in * (2 * H1P) + 2 * H1P * H2P + 2 * H2P)
    bytes_accessed = (sum(int(p.size) * p.dtype.itemsize for p in packed)
                      + B_pad * d_in * state.dtype.itemsize
                      + B_pad * 2 * 4)

    vmem_limit = (48 if bm > 1024 else 32) * 1024 * 1024

    q = pl.pallas_call(
        critic_kernel,
        grid_spec=pltpu.PrefetchScalarGridSpec(
            num_scalar_prefetch=0,
            grid=grid,
            in_specs=in_specs,
            out_specs=out_specs,
        ),
        out_shape=out_shape,
        compiler_params=pltpu.CompilerParams(
            dimension_semantics=("parallel",),
            vmem_limit_bytes=vmem_limit,
        ),
        cost_estimate=pl.CostEstimate(
            flops=int(flops), transcendentals=0,
            bytes_accessed=int(bytes_accessed)),
    )(state, action, *packed)

    return q[:B, 0:1], q[:B, 1:2]


def critic_forward_ref(state, action, params):
    """Pure-JAX reference (mirrors the PyTorch forward exactly)."""
    w1, b1, w2, b2, w3, b3, w4, b4, w5, b5, w6, b6 = params
    sa = jnp.concatenate([state, action], axis=1)
    c1 = jax.nn.relu(sa @ w1 + b1)
    c1 = jax.nn.relu(c1 @ w2 + b2)
    c1 = c1 @ w3 + b3
    c2 = jax.nn.relu(sa @ w4 + b4)
    c2 = jax.nn.relu(c2 @ w5 + b5)
    c2 = c2 @ w6 + b6
    return c1, c2


if __name__ == "__main__":
    key = jax.random.PRNGKey(0)
    batch, state_dim, action_dim = 8, 16, 8

    k_s, k_a, k_p = jax.random.split(key, 3)
    state = jax.random.normal(k_s, (batch, state_dim), jnp.float32)
    action = jax.random.normal(k_a, (batch, action_dim), jnp.float32)
    params = init_critic_params(k_p, state_dim, action_dim)

    r1, r2 = critic_forward_ref(state, action, params)

    # Weights packed ONCE (hoisted out of the per-call path).
    packed_f32 = pack_critic_params(params, state_dim, jnp.float32)
    packed_bf16 = pack_critic_params(params, state_dim, jnp.bfloat16)

    # f32 compute path (exact check).
    q1, q2 = critic_forward(state, action, packed_f32)
    q1 = jax.block_until_ready(q1)
    q2 = jax.block_until_ready(q2)
    assert q1.shape == (batch, 1) and q2.shape == (batch, 1)
    assert jnp.allclose(q1, r1, atol=1e-3, rtol=1e-3)
    assert jnp.allclose(q2, r2, atol=1e-3, rtol=1e-3)

    # bf16-operand fast path (default for production); f32 accumulation keeps
    # error small, so a much tighter tolerance than before.
    p1, p2 = critic_forward(state, action, packed_bf16)
    p1 = jax.block_until_ready(p1)
    p2 = jax.block_until_ready(p2)
    assert jnp.allclose(p1, r1, atol=5e-2, rtol=5e-2)
    assert jnp.allclose(p2, r2, atol=5e-2, rtol=5e-2)

    print("KERNEL_OK")
</pallas_src>

<mosaic_0001>
module attributes {stable_mosaic.version = 11 : i64} {
  func.func @critic_kernel(%arg0: i32, %arg1: memref<8x16xf32, #tpu.memory_space<vmem>>, %arg2: memref<8x8xf32, #tpu.memory_space<vmem>>, %arg3: memref<16x1024xf32, #tpu.memory_space<vmem>>, %arg4: memref<8x1024xf32, #tpu.memory_space<vmem>>, %arg5: memref<1x1024xf32, #tpu.memory_space<vmem>>, %arg6: memref<512x384xf32, #tpu.memory_space<vmem>>, %arg7: memref<1x384xf32, #tpu.memory_space<vmem>>, %arg8: memref<512x384xf32, #tpu.memory_space<vmem>>, %arg9: memref<1x384xf32, #tpu.memory_space<vmem>>, %arg10: memref<2x384xf32, #tpu.memory_space<vmem>>, %arg11: memref<1x2xf32, #tpu.memory_space<vmem>>, %arg12: memref<8x2xf32, #tpu.memory_space<vmem>>) attributes {dimension_semantics = [#tpu.dimension_semantics<parallel>], iteration_bounds = array<i64: 1>, scalar_prefetch = 0 : i64, scratch_operands = 0 : i64, tpu.core_type = #tpu.core_type<tc>, window_params = [{transform_indices = @transform_0, window_bounds = array<i64: 8, 16>}, {transform_indices = @transform_1, window_bounds = array<i64: 8, 8>}, {pipeline_mode = #tpu.pipeline_mode<synchronous>, transform_indices = @transform_2, window_bounds = array<i64: 16, 1024>}, {pipeline_mode = #tpu.pipeline_mode<synchronous>, transform_indices = @transform_3, window_bounds = array<i64: 8, 1024>}, {pipeline_mode = #tpu.pipeline_mode<synchronous>, transform_indices = @transform_4, window_bounds = array<i64: 1, 1024>}, {pipeline_mode = #tpu.pipeline_mode<synchronous>, transform_indices = @transform_5, window_bounds = array<i64: 512, 384>}, {pipeline_mode = #tpu.pipeline_mode<synchronous>, transform_indices = @transform_6, window_bounds = array<i64: 1, 384>}, {pipeline_mode = #tpu.pipeline_mode<synchronous>, transform_indices = @transform_7, window_bounds = array<i64: 512, 384>}, {pipeline_mode = #tpu.pipeline_mode<synchronous>, transform_indices = @transform_8, window_bounds = array<i64: 1, 384>}, {pipeline_mode = #tpu.pipeline_mode<synchronous>, transform_indices = @transform_9, window_bounds = array<i64: 2, 384>}, {pipeline_mode = #tpu.pipeline_mode<synchronous>, transform_indices = @transform_10, window_bounds = array<i64: 1, 2>}, {transform_indices = @transform_11, window_bounds = array<i64: 8, 2>}]} {
    %c0 = arith.constant 0 : index
    %c0_0 = arith.constant 0 : index
    %0 = vector.load %arg1[%c0, %c0_0] : memref<8x16xf32, #tpu.memory_space<vmem>>, vector<8x16xf32>
    %c0_1 = arith.constant 0 : index
    %c0_2 = arith.constant 0 : index
    %1 = vector.load %arg2[%c0_1, %c0_2] : memref<8x8xf32, #tpu.memory_space<vmem>>, vector<8x8xf32>
    %c0_3 = arith.constant 0 : index
    %c0_4 = arith.constant 0 : index
    %2 = vector.load %arg3[%c0_3, %c0_4] : memref<16x1024xf32, #tpu.memory_space<vmem>>, vector<16x1024xf32>
    %cst = arith.constant dense<0.000000e+00> : vector<8x1024xf32>
    %3 = tpu.matmul %0, %2, %cst {dimension_numbers = #tpu.dot_dimension_numbers<[1], [0], [0], [1], [0, 0, 1, 1], [], []>} : vector<8x16xf32>, vector<16x1024xf32>, vector<8x1024xf32> -> vector<8x1024xf32>
    %c0_5 = arith.constant 0 : index
    %c0_6 = arith.constant 0 : index
    %4 = vector.load %arg4[%c0_5, %c0_6] : memref<8x1024xf32, #tpu.memory_space<vmem>>, vector<8x1024xf32>
    %cst_7 = arith.constant dense<0.000000e+00> : vector<8x1024xf32>
    %5 = tpu.matmul %1, %4, %cst_7 {dimension_numbers = #tpu.dot_dimension_numbers<[1], [0], [0], [1], [0, 0, 1, 1], [], []>} : vector<8x8xf32>, vector<8x1024xf32>, vector<8x1024xf32> -> vector<8x1024xf32>
    %6 = arith.addf %3, %5 : vector<8x1024xf32>
    %c0_8 = arith.constant 0 : index
    %c0_9 = arith.constant 0 : index
    %7 = vector.load %arg5[%c0_8, %c0_9] : memref<1x1024xf32, #tpu.memory_space<vmem>>, vector<1x1024xf32>
    %8 = vector.broadcast %7 : vector<1x1024xf32> to vector<8x1024xf32>
    %9 = arith.addf %6, %8 : vector<8x1024xf32>
    %cst_10 = arith.constant 0.000000e+00 : f32
    %10 = vector.broadcast %cst_10 : f32 to vector<8x1024xf32>
    %11 = arith.maximumf %9, %10 : vector<8x1024xf32>
    %12 = vector.extract_strided_slice %11 {offsets = [0, 0], sizes = [8, 512], strides = [1, 1]} : vector<8x1024xf32> to vector<8x512xf32>
    %13 = vector.extract_strided_slice %11 {offsets = [0, 512], sizes = [8, 512], strides = [1, 1]} : vector<8x1024xf32> to vector<8x512xf32>
    %c0_11 = arith.constant 0 : index
    %c0_12 = arith.constant 0 : index
    %14 = vector.load %arg6[%c0_11, %c0_12] : memref<512x384xf32, #tpu.memory_space<vmem>>, vector<512x384xf32>
    %cst_13 = arith.constant dense<0.000000e+00> : vector<8x384xf32>
    %15 = tpu.matmul %12, %14, %cst_13 {dimension_numbers = #tpu.dot_dimension_numbers<[1], [0], [0], [1], [0, 0, 1, 1], [], []>} : vector<8x512xf32>, vector<512x384xf32>, vector<8x384xf32> -> vector<8x384xf32>
    %c0_14 = arith.constant 0 : index
    %c0_15 = arith.constant 0 : index
    %16 = vector.load %arg7[%c0_14, %c0_15] : memref<1x384xf32, #tpu.memory_space<vmem>>, vector<1x384xf32>
    %17 = vector.broadcast %16 : vector<1x384xf32> to vector<8x384xf32>
    %18 = arith.addf %15, %17 : vector<8x384xf32>
    %cst_16 = arith.constant 0.000000e+00 : f32
    %19 = vector.broadcast %cst_16 : f32 to vector<8x384xf32>
    %20 = arith.maximumf %18, %19 : vector<8x384xf32>
    %c0_17 = arith.constant 0 : index
    %c0_18 = arith.constant 0 : index
    %21 = vector.load %arg8[%c0_17, %c0_18] : memref<512x384xf32, #tpu.memory_space<vmem>>, vector<512x384xf32>
    %cst_19 = arith.constant dense<0.000000e+00> : vector<8x384xf32>
    %22 = tpu.matmul %13, %21, %cst_19 {dimension_numbers = #tpu.dot_dimension_numbers<[1], [0], [0], [1], [0, 0, 1, 1], [], []>} : vector<8x512xf32>, vector<512x384xf32>, vector<8x384xf32> -> vector<8x384xf32>
    %c0_20 = arith.constant 0 : index
    %c0_21 = arith.constant 0 : index
    %23 = vector.load %arg9[%c0_20, %c0_21] : memref<1x384xf32, #tpu.memory_space<vmem>>, vector<1x384xf32>
    %24 = vector.broadcast %23 : vector<1x384xf32> to vector<8x384xf32>
    %25 = arith.addf %22, %24 : vector<8x384xf32>
    %cst_22 = arith.constant 0.000000e+00 : f32
    %26 = vector.broadcast %cst_22 : f32 to vector<8x384xf32>
    %27 = arith.maximumf %25, %26 : vector<8x384xf32>
    %c0_23 = arith.constant 0 : index
    %c0_24 = arith.constant 0 : index
    %28 = vector.load %arg10[%c0_23, %c0_24] : memref<2x384xf32, #tpu.memory_space<vmem>>, vector<1x384xf32>
    %29 = vector.broadcast %28 : vector<1x384xf32> to vector<8x384xf32>
    %30 = arith.mulf %20, %29 : vector<8x384xf32>
    %cst_25 = arith.constant dense<0.000000e+00> : vector<8xf32>
    %31 = vector.multi_reduction <add>, %30, %cst_25 [1] : vector<8x384xf32> to vector<8xf32>
    %32 = vector.shape_cast %31 : vector<8xf32> to vector<8x1xf32>
    %c0_26 = arith.constant 0 : index
    %c0_27 = arith.constant 0 : index
    %33 = vector.load %arg11[%c0_26, %c0_27] : memref<1x2xf32, #tpu.memory_space<vmem>>, vector<1x1xf32>
    %34 = vector.broadcast %33 : vector<1x1xf32> to vector<8x1xf32>
    %35 = arith.addf %32, %34 : vector<8x1xf32>
    %c1 = arith.constant 1 : index
    %c0_28 = arith.constant 0 : index
    %36 = vector.load %arg10[%c1, %c0_28] : memref<2x384xf32, #tpu.memory_space<vmem>>, vector<1x384xf32>
    %37 = vector.broadcast %36 : vector<1x384xf32> to vector<8x384xf32>
    %38 = arith.mulf %27, %37 : vector<8x384xf32>
    %cst_29 = arith.constant dense<0.000000e+00> : vector<8xf32>
    %39 = vector.multi_reduction <add>, %38, %cst_29 [1] : vector<8x384xf32> to vector<8xf32>
    %40 = vector.shape_cast %39 : vector<8xf32> to vector<8x1xf32>
    %c0_30 = arith.constant 0 : index
    %c1_31 = arith.constant 1 : index
    %41 = vector.load %arg11[%c0_30, %c1_31] : memref<1x2xf32, #tpu.memory_space<vmem>>, vector<1x1xf32>
    %42 = vector.broadcast %41 : vector<1x1xf32> to vector<8x1xf32>
    %43 = arith.addf %40, %42 : vector<8x1xf32>
    %44 = tpu.concatenate %35, %43 in 1 : vector<8x1xf32>, vector<8x1xf32> -> vector<8x2xf32>
    %c0_32 = arith.constant 0 : index
    %c0_33 = arith.constant 0 : index
    %45 = vector.load %arg12[%c0_32, %c0_33] : memref<8x2xf32, #tpu.memory_space<vmem>>, vector<8x2xf32>
    tpu.vector_store %arg12[%c0_32, %c0_33], %44 {strides = array<i32>} : memref<8x2xf32, #tpu.memory_space<vmem>>, vector<8x2xf32>,
    return
  }
  func.func @transform_0(%arg0: i32) -> (i32, i32) {
    %c0_i32 = arith.constant 0 : i32
    %c0_i32_0 = arith.constant 0 : i32
    return %arg0, %c0_i32 : i32, i32
  }
  func.func @transform_1(%arg0: i32) -> (i32, i32) {
    %c0_i32 = arith.constant 0 : i32
    %c0_i32_0 = arith.constant 0 : i32
    return %arg0, %c0_i32 : i32, i32
  }
  func.func @transform_2(%arg0: i32) -> (i32, i32) {
    %c0_i32 = arith.constant 0 : i32
    %c0_i32_0 = arith.constant 0 : i32
    %c0_i32_1 = arith.constant 0 : i32
    return %c0_i32, %c0_i32_0 : i32, i32
  }
  func.func @transform_3(%arg0: i32) -> (i32, i32) {
    %c0_i32 = arith.constant 0 : i32
    %c0_i32_0 = arith.constant 0 : i32
    %c0_i32_1 = arith.constant 0 : i32
    return %c0_i32, %c0_i32_0 : i32, i32
  }
  func.func @transform_4(%arg0: i32) -> (i32, i32) {
    %c0_i32 = arith.constant 0 : i32
    %c0_i32_0 = arith.constant 0 : i32
    %c0_i32_1 = arith.constant 0 : i32
    return %c0_i32, %c0_i32_0 : i32, i32
  }
  func.func @transform_5(%arg0: i32) -> (i32, i32) {
    %c0_i32 = arith.constant 0 : i32
    %c0_i32_0 = arith.constant 0 : i32
    %c0_i32_1 = arith.constant 0 : i32
    return %c0_i32, %c0_i32_0 : i32, i32
  }
  func.func @transform_6(%arg0: i32) -> (i32, i32) {
    %c0_i32 = arith.constant 0 : i32
    %c0_i32_0 = arith.constant 0 : i32
    %c0_i32_1 = arith.constant 0 : i32
    return %c0_i32, %c0_i32_0 : i32, i32
  }
  func.func @transform_7(%arg0: i32) -> (i32, i32) {
    %c0_i32 = arith.constant 0 : i32
    %c0_i32_0 = arith.constant 0 : i32
    %c0_i32_1 = arith.constant 0 : i32
    return %c0_i32, %c0_i32_0 : i32, i32
  }
  func.func @transform_8(%arg0: i32) -> (i32, i32) {
    %c0_i32 = arith.constant 0 : i32
    %c0_i32_0 = arith.constant 0 : i32
    %c0_i32_1 = arith.constant 0 : i32
    return %c0_i32, %c0_i32_0 : i32, i32
  }
  func.func @transform_9(%arg0: i32) -> (i32, i32) {
    %c0_i32 = arith.constant 0 : i32
    %c0_i32_0 = arith.constant 0 : i32
    %c0_i32_1 = arith.constant 0 : i32
    return %c0_i32, %c0_i32_0 : i32, i32
  }
  func.func @transform_10(%arg0: i32) -> (i32, i32) {
    %c0_i32 = arith.constant 0 : i32
    %c0_i32_0 = arith.constant 0 : i32
    %c0_i32_1 = arith.constant 0 : i32
    return %c0_i32, %c0_i32_0 : i32, i32
  }
  func.func @transform_11(%arg0: i32) -> (i32, i32) {
    %c0_i32 = arith.constant 0 : i32
    %c0_i32_0 = arith.constant 0 : i32
    return %arg0, %c0_i32 : i32, i32
  }
}

</mosaic_0001>

<bundles_post_ra>
// kernel: tpu_custom_call.1
= control target key start
LH: loop header
LB: loop body
LE: loop exit
PB: predicated region body
PF: predicated region fallthrough
CT: control target
= control target key end

     0   :  { %16 = vsyncpa [#allocation3], 0  ;;  %s2375_s0 = inlined_call_operand.hbm [shape: f32[8,16], index: 0, kind: input, shape index: {}]   ;;  %s2376_s1 = inlined_call_operand.hbm [shape: f32[8,8], index: 1, kind: input, shape index: {}]   ;;  %s2377_s2 = inlined_call_operand.hbm [shape: f32[16,1024], index: 2, kind: input, shape index: {}]   ;;  %s2378_s3 = inlined_call_operand.hbm [shape: f32[8,1024], index: 3, kind: input, shape index: {}]   ;;  %s2379_s4 = inlined_call_operand.hbm [shape: f32[1,1024], index: 4, kind: input, shape index: {}]   ;;  %s2380_s5 = inlined_call_operand.hbm [shape: f32[512,384], index: 5, kind: input, shape index: {}]   ;;  %s2381_s6 = inlined_call_operand.vmem [shape: f32[1,384], index: 6, kind: input, shape index: {}]   ;;  %s2382_s7 = inlined_call_operand.hbm [shape: f32[512,384], index: 7, kind: input, shape index: {}]   ;;  %s2383_s8 = inlined_call_operand.vmem [shape: f32[1,384], index: 8, kind: input, shape index: {}]   ;;  %s2384_s9 = inlined_call_operand.vmem [shape: f32[2,384], index: 9, kind: input, shape index: {}]   ;;  %s2385_s10 = inlined_call_operand.vmem [shape: f32[1,2], index: 10, kind: input, shape index: {}]   ;;  %s2386_s11 = inlined_call_operand.vmem [shape: f32[8,2], index: 11, kind: output, shape index: {}]  }
   0x1   :  { %17 = vsyncpa [#allocation5], 0 }
   0x2   :  { %18 = vsyncpa [#allocation8], 0 }
   0x3   :  { %19 = vsyncpa [#allocation11], 0  ;;  %s2153_s17 = smov [#allocation4]   ;;  %s2154_s19 = smov [#allocation7]  }
   0x4   :  { %s36_s18 = sshll.u32 %s2153_s17, 4  ;;  %s58_s20 = sshll.u32 %s2154_s19, 4  ;;  %s37_s18 = int_to_ptr.vmem [resolvable:$true] %s36_s18  ;;  %s59_s20 = int_to_ptr.vmem [resolvable:$true] %s58_s20 }
   0x5   :  { %s2013_s21 = scalar_lea.vmem %s37_s18, 128  ;;  %p2018_p1 = scmp.lt.s32.totalorder %s37_s18, %s37_s18 }
   0x6   :  { %p2014_p0 = scmp.ne.s32.totalorder %s37_s18, %s2013_s21  ;;  %p2019_p2 = scmp.lt.s32.totalorder %s2013_s21, %s2013_s21 }
   0x8   :  { %p2020_p3 = por %p2019_p2, %p2018_p1 }
   0xa   :  { %p2021_p4 = pnand %p2020_p3, %p2014_p0 }
   0xc   :  { %2024 = shalt.err (!%p2021_p4)
}
   0xd   :  { %39 = dma.hbm_to_vmem [thread:$0]  %s2376_s1, 128, %s37_s18, [#allocation5]  }
   0xe   :  { %s2033_s24 = scalar_lea.vmem %s59_s20, 1024  ;;  %p2038_p6 = scmp.lt.s32.totalorder %s59_s20, %s59_s20 }
   0xf   :  { %p2034_p5 = scmp.ne.s32.totalorder %s59_s20, %s2033_s24  ;;  %p2039_p7 = scmp.lt.s32.totalorder %s2033_s24, %s2033_s24 }
  0x11   :  { %p2040_p8 = por %p2039_p7, %p2038_p6 }
  0x13   :  { %p2041_p9 = pnand %p2040_p8, %p2034_p5 }
  0x15   :  { %2044 = shalt.err (!%p2041_p9)
}
  0x16   :  { %61 = dma.hbm_to_vmem [thread:$0]  %s2378_s3, 1024, %s59_s20, [#allocation8]  }
  0x17   :  { %s2155_s27 = smov [#allocation10]  }
  0x18   :  { %s77_s28 = sshll.u32 %s2155_s27, 4  ;;  %s78_s28 = int_to_ptr.vmem [resolvable:$true] %s77_s28 }
  0x19   :  { %s2053_s29 = scalar_lea.vmem %s78_s28, 24576  ;;  %p2058_p11 = scmp.lt.s32.totalorder %s78_s28, %s78_s28 }
  0x1a   :  { %p2054_p10 = scmp.ne.s32.totalorder %s78_s28, %s2053_s29  ;;  %p2059_p12 = scmp.lt.s32.totalorder %s2053_s29, %s2053_s29 }
  0x1c   :  { %p2060_p13 = por %p2059_p12, %p2058_p11 }
  0x1e   :  { %p2061_p0 = pnand %p2060_p13, %p2054_p10 }
  0x20   :  { %2064 = shalt.err (!%p2061_p0)
}
  0x21   :  { %s2156_s1 = smov 384   ;;  %s2157_s30 = smov 24  }
  0x22   :  { %83 = dma.hbm_to_vmem [thread:$0]  %s2380_s5, 24576, %s78_s28, [#allocation11], %s2156_s1, %s2156_s1, %s2157_s30  }
  0x23   :  { %s2158_s3 = smov [#allocation2]   ;;  %s2159_s15 = smov [#allocation6]  }
  0x24   :  { %s26_s14 = sshll.u32 %s2158_s3, 4  ;;  %s45_s16 = sshll.u32 %s2159_s15, 4  ;;  %s27_s14 = int_to_ptr.vmem [resolvable:$true] %s26_s14  ;;  %s46_s16 = int_to_ptr.vmem [resolvable:$true] %s45_s16 }
  0x25   :  { %s2073_s17 = scalar_lea.vmem %s27_s14, 128  ;;  %p2078_p2 = scmp.lt.s32.totalorder %s27_s14, %s27_s14 }
  0x26   :  { %p2074_p1 = scmp.ne.s32.totalorder %s27_s14, %s2073_s17  ;;  %p2079_p3 = scmp.lt.s32.totalorder %s2073_s17, %s2073_s17 }
  0x28   :  { %p2080_p4 = por %p2079_p3, %p2078_p2 }
  0x2a   :  { %p2081_p5 = pnand %p2080_p4, %p2074_p1 }
  0x2c   :  { %2084 = shalt.err (!%p2081_p5)
}
  0x2d   :  { %29 = dma.hbm_to_vmem [thread:$0]  %s2375_s0, 128, %s27_s14, [#allocation3]  }
  0x2e   :  { %s2093_s20 = scalar_lea.vmem %s46_s16, 2048  ;;  %p2098_p7 = scmp.lt.s32.totalorder %s46_s16, %s46_s16 }
  0x2f   :  { %p2094_p6 = scmp.ne.s32.totalorder %s46_s16, %s2093_s20  ;;  %p2099_p8 = scmp.lt.s32.totalorder %s2093_s20, %s2093_s20 }
  0x31   :  { %p2100_p9 = por %p2099_p8, %p2098_p7 }
  0x33   :  { %p2101_p10 = pnand %p2100_p9, %p2094_p6 }
  0x35   :  { %2104 = shalt.err (!%p2101_p10)
}
  0x36   :  { %s2160_s5 = smov 1024   ;;  %s2161_s21 = smov 64  }
  0x37   :  { %51 = dma.hbm_to_vmem [thread:$0]  %s2377_s2, 2048, %s46_s16, [#allocation5], %s2160_s5, %s2160_s5, %s2161_s21  }
  0x38   :  { %s2162_s24 = smov [#allocation9]   ;;  %s2163_s26 = smov [#allocation12]  }
  0x39   :  { %s68_s25 = sshll.u32 %s2162_s24, 4  ;;  %s91_s27 = sshll.u32 %s2163_s26, 4  ;;  %s69_s25 = int_to_ptr.vmem [resolvable:$true] %s68_s25  ;;  %s92_s27 = int_to_ptr.vmem [resolvable:$true] %s91_s27 }
  0x3a   :  { %s2113_s0 = scalar_lea.vmem %s69_s25, 128  ;;  %p2118_p12 = scmp.lt.s32.totalorder %s69_s25, %s69_s25 }
  0x3b   :  { %p2114_p11 = scmp.ne.s32.totalorder %s69_s25, %s2113_s0  ;;  %p2119_p13 = scmp.lt.s32.totalorder %s2113_s0, %s2113_s0 }
  0x3d   :  { %p2120_p0 = por %p2119_p13, %p2118_p12 }
  0x3f   :  { %p2121_p1 = pnand %p2120_p0, %p2114_p11 }
  0x41   :  { %2124 = shalt.err (!%p2121_p1)
}
  0x42   :  { %71 = dma.hbm_to_vmem [thread:$0]  %s2379_s4, 128, %s69_s25, [#allocation8]  }
  0x43   :  { %s2133_s12 = scalar_lea.vmem %s92_s27, 24576  ;;  %p2138_p3 = scmp.lt.s32.totalorder %s92_s27, %s92_s27 }
  0x44   :  { %p2134_p2 = scmp.ne.s32.totalorder %s92_s27, %s2133_s12  ;;  %p2139_p4 = scmp.lt.s32.totalorder %s2133_s12, %s2133_s12 }
  0x46   :  { %p2140_p5 = por %p2139_p4, %p2138_p3 }
  0x48   :  { %p2141_p6 = pnand %p2140_p5, %p2134_p2 }
  0x4a   :  { %2144 = shalt.err (!%p2141_p6)
}
  0x4b   :  { %97 = dma.hbm_to_vmem [thread:$0]  %s2382_s7, 24576, %s92_s27, [#allocation11], %s2156_s1, %s2156_s1, %s2157_s30  }
  0x4c   :  { %2145 = dma.done.wait [#allocation3], 128  }
  0x4d   :  { %2146 = vsyncadd [#allocation3], 4294967168 }
  0x4e   :  { %2147 = dma.done.wait [#allocation5], 2176  }
  0x4f   :  { %2148 = vsyncadd [#allocation5], 4294965120 }
  0x50   :  { %2149 = dma.done.wait [#allocation8], 1152  }
  0x51   :  { %2150 = vsyncadd [#allocation8], 4294966144 }
  0x52   :  { %2151 = dma.done.wait [#allocation11], 49152  }
  0x53   :  { %2152 = vsyncadd [#allocation11], 4294918144  ;;  %v2164_v0 = vmov 0.0   ;;  %v144_v1 = vld [vmem:[#allocation7 + $0x8] sm:$0xff]  ;;  %v146_v2 = vld [vmem:[#allocation7 + $0x18] sm:$0xff]  ;;  %vm151_vm0 = vcmask 64512  }
  0x54   :  { %219 = vmatprep.mubr.f32.mxu0 %v2164_v0  ;;  %290 = vmatprep.mubr.f32.mxu1 %v2164_v0  ;;  %v143_v3 = vld [vmem:[#allocation7] sm:$0xff]  ;;  %v145_v4 = vld [vmem:[#allocation7 + $0x10] sm:$0xff]  ;;  %v126_v5 = vld [vmem:[#allocation4] sm:$0xff]  ;;  %vm439_vm1 = vcmask 130048   ;;  %vm1831_vm2 = vcmask 7168   ;;  %vm1833_vm3 = vcmask 15360  }
  0x55   :  { %185 = vmatprep.subr.mxu0 %v144_v1  ;;  %256 = vmatprep.subr.mxu1 %v146_v2  ;;  %v148_v6 = vld [vmem:[#allocation7 + $0x28] sm:$0xff]  ;;  %v147_v7 = vld [vmem:[#allocation7 + $0x20] sm:$0xff]  ;;  %v150_v8 = vld [vmem:[#allocation7 + $0x38] sm:$0xff] }
  0x56   :  { %186 = vmatpush1.msra.mxu0 %v143_v3  ;;  %257 = vmatpush1.msra.mxu1 %v145_v4  ;;  %v149_v9 = vld [vmem:[#allocation7 + $0x30] sm:$0xff]  ;;  %v136_v10 = vld [vmem:[#allocation6 + $0x48] sm:$0xff]  ;;  %v138_v11 = vld [vmem:[#allocation6 + $0x58] sm:$0xff] }
  0x57   :  { %1843 = vmatmul.mubr.msk.f32.vlgmr.msra.gmra.mxu0 %vm151_vm0, %v126_v5  ;;  %1844 = vmatmul.mubr.msk.f32.vlgmr.msra.gmra.mxu1 %vm151_vm0, %v126_v5  ;;  %v135_v12 = vld [vmem:[#allocation6 + $0x40] sm:$0xff]  ;;  %v137_v13 = vld [vmem:[#allocation6 + $0x50] sm:$0xff]  ;;  %v128_v14 = vld [vmem:[#allocation6 + $0x8] sm:$0xff] }
  0x58   :  { %327 = vmatprep.subr.mxu0 %v148_v6  ;;  %398 = vmatprep.subr.mxu1 %v150_v8  ;;  %v130_v15 = vld [vmem:[#allocation6 + $0x18] sm:$0xff]  ;;  %v127_v16 = vld [vmem:[#allocation6] sm:$0xff]  ;;  %v129_v17 = vld [vmem:[#allocation6 + $0x10] sm:$0xff] }
  0x59   :  { %328 = vmatpush1.msra.mxu0 %v147_v7  ;;  %361 = vmatprep.mubr.f32.mxu0 %v2164_v0  ;;  %v125_v18 = vld [vmem:[#allocation2] sm:$0xff]  ;;  %v140_v19 = vld [vmem:[#allocation6 + $0x68] sm:$0xff]  ;;  %v142_v20 = vld [vmem:[#allocation6 + $0x78] sm:$0xff] }
  0x5a   :  { %399 = vmatpush1.msra.mxu1 %v149_v9  ;;  %432 = vmatprep.mubr.f32.mxu1 %v2164_v0  ;;  %v139_v21 = vld [vmem:[#allocation6 + $0x60] sm:$0xff]  ;;  %v141_v22 = vld [vmem:[#allocation6 + $0x70] sm:$0xff]  ;;  %v132_v23 = vld [vmem:[#allocation6 + $0x28] sm:$0xff] }
  0x5b   :  { %1845 = vmatmul.mubr.msk.f32.vlgmr.msra.gmra.mxu0 %vm151_vm0, %v126_v5  ;;  %1846 = vmatmul.mubr.msk.f32.vlgmr.msra.gmra.mxu1 %vm151_vm0, %v126_v5  ;;  %v134_v24 = vld [vmem:[#allocation6 + $0x38] sm:$0xff]  ;;  %v131_v25 = vld [vmem:[#allocation6 + $0x20] sm:$0xff]  ;;  %v133_v26 = vld [vmem:[#allocation6 + $0x30] sm:$0xff] }
  0x5c   :  { %471 = vmatprep.subr.mxu0 %v136_v10  ;;  %542 = vmatprep.subr.mxu1 %v138_v11  ;;  %v831_v27 = vld [vmem:[#allocation10 + $0x170] sm:$0xff]  ;;  %v830_v29 = vld [vmem:[#allocation10 + $0x168] sm:$0xff]  ;;  %v828_v31 = vld [vmem:[#allocation10 + $0x158] sm:$0xff] }
  0x5d   :  { %472 = vmatpush1.msra.mxu0 %v135_v12  ;;  %543 = vmatpush1.msra.mxu1 %v137_v13  ;;  %v927_v28 = vld [vmem:[#allocation10 + $0x470] sm:$0xff]  ;;  %v926_v30 = vld [vmem:[#allocation10 + $0x468] sm:$0xff]  ;;  %v924_v32 = vld [vmem:[#allocation10 + $0x458] sm:$0xff] }
  0x5e   :  { %473 = vmatprep.subr.mxu0 %v128_v14  ;;  %544 = vmatprep.subr.mxu1 %v130_v15  ;;  %v827_v33 = vld [vmem:[#allocation10 + $0x150] sm:$0xff]  ;;  %v825_v35 = vld [vmem:[#allocation10 + $0x140] sm:$0xff]  ;;  %v824_v37 = vld [vmem:[#allocation10 + $0x138] sm:$0xff] }
  0x5f   :  { %474 = vmatpush1.msra.mxu0 %v127_v16  ;;  %507 = vmatprep.mubr.f32.mxu0 %v2164_v0  ;;  %v923_v34 = vld [vmem:[#allocation10 + $0x450] sm:$0xff]  ;;  %v921_v36 = vld [vmem:[#allocation10 + $0x440] sm:$0xff]  ;;  %v920_v38 = vld [vmem:[#allocation10 + $0x438] sm:$0xff] }
  0x60   :  { %545 = vmatpush1.msra.mxu1 %v129_v17  ;;  %578 = vmatprep.mubr.f32.mxu1 %v2164_v0  ;;  %v822_v39 = vld [vmem:[#allocation10 + $0x128] sm:$0xff]  ;;  %v821_v41 = vld [vmem:[#allocation10 + $0x120] sm:$0xff]  ;;  %v819_v43 = vld [vmem:[#allocation10 + $0x110] sm:$0xff] }
  0x61   :  { %1847 = vmatmul.mubr.msk.f32.vlgmr.msra.gmra.mxu0 %vm439_vm1, %v125_v18  ;;  %1848 = vmatmul.mubr.msk.f32.vlgmr.msra.gmra.mxu1 %vm439_vm1, %v125_v18  ;;  %v918_v40 = vld [vmem:[#allocation10 + $0x428] sm:$0xff]  ;;  %v917_v42 = vld [vmem:[#allocation10 + $0x420] sm:$0xff]  ;;  %v915_v44 = vld [vmem:[#allocation10 + $0x410] sm:$0xff] }
  0x62   :  { %613 = vmatprep.subr.mxu0 %v140_v19  ;;  %684 = vmatprep.subr.mxu1 %v142_v20  ;;  %v818_v45 = vld [vmem:[#allocation10 + $0x108] sm:$0xff]  ;;  %v816_v47 = vld [vmem:[#allocation10 + $0xf8] sm:$0xff]  ;;  %v815_v49 = vld [vmem:[#allocation10 + $0xf0] sm:$0xff] }
  0x63   :  { %614 = vmatpush1.msra.mxu0 %v139_v21  ;;  %685 = vmatpush1.msra.mxu1 %v141_v22  ;;  %v914_v46 = vld [vmem:[#allocation10 + $0x408] sm:$0xff]  ;;  %v912_v48 = vld [vmem:[#allocation10 + $0x3f8] sm:$0xff]  ;;  %v911_v50 = vld [vmem:[#allocation10 + $0x3f0] sm:$0xff] }
  0x64   :  { %615 = vmatprep.subr.mxu0 %v132_v23  ;;  %686 = vmatprep.subr.mxu1 %v134_v24  ;;  %v813_v51 = vld [vmem:[#allocation10 + $0xe0] sm:$0xff]  ;;  %v812_v53 = vld [vmem:[#allocation10 + $0xd8] sm:$0xff]  ;;  %v810_v55 = vld [vmem:[#allocation10 + $0xc8] sm:$0xff] }
  0x65   :  { %616 = vmatpush1.msra.mxu0 %v131_v25  ;;  %649 = vmatprep.mubr.f32.mxu0 %v2164_v0  ;;  %v909_v52 = vld [vmem:[#allocation10 + $0x3e0] sm:$0xff]  ;;  %v908_v54 = vld [vmem:[#allocation10 + $0x3d8] sm:$0xff]  ;;  %v906_v56 = vld [vmem:[#allocation10 + $0x3c8] sm:$0xff] }
  0x66   :  { %687 = vmatpush1.msra.mxu1 %v133_v26  ;;  %720 = vmatprep.mubr.f32.mxu1 %v2164_v0  ;;  %v809_v57 = vld [vmem:[#allocation10 + $0xc0] sm:$0xff]  ;;  %v807_v59 = vld [vmem:[#allocation10 + $0xb0] sm:$0xff]  ;;  %v806_v61 = vld [vmem:[#allocation10 + $0xa8] sm:$0xff] }
  0x67   :  { %1849 = vmatmul.mubr.msk.f32.vlgmr.msra.gmra.mxu0 %vm439_vm1, %v125_v18  ;;  %1850 = vmatmul.mubr.msk.f32.vlgmr.msra.gmra.mxu1 %vm439_vm1, %v125_v18  ;;  %v905_v58 = vld [vmem:[#allocation10 + $0x3c0] sm:$0xff]  ;;  %v903_v60 = vld [vmem:[#allocation10 + $0x3b0] sm:$0xff]  ;;  %v902_v62 = vld [vmem:[#allocation10 + $0x3a8] sm:$0xff] }
  0x68   :  { %994 = vmatprep.subr.mxu0 %v831_v27  ;;  %1065 = vmatprep.subr.mxu1 %v927_v28  ;;  %v804_v63 = vld [vmem:[#allocation10 + $0x98] sm:$0xff]  ;;  %v803_v1 = vld [vmem:[#allocation10 + $0x90] sm:$0xff]  ;;  %v801_v3 = vld [vmem:[#allocation10 + $0x80] sm:$0xff] }
  0x69   :  { %995 = vmatpush1.msra.mxu0 %v830_v29  ;;  %1066 = vmatpush1.msra.mxu1 %v926_v30  ;;  %v900_v0 = vld [vmem:[#allocation10 + $0x398] sm:$0xff]  ;;  %v899_v2 = vld [vmem:[#allocation10 + $0x390] sm:$0xff]  ;;  %v897_v4 = vld [vmem:[#allocation10 + $0x380] sm:$0xff] }
  0x6a   :  { %996 = vmatprep.subr.mxu0 %v828_v31  ;;  %1067 = vmatprep.subr.mxu1 %v924_v32  ;;  %v800_v5 = vld [vmem:[#allocation10 + $0x78] sm:$0xff]  ;;  %v798_v7 = vld [vmem:[#allocation10 + $0x68] sm:$0xff]  ;;  %v797_v9 = vld [vmem:[#allocation10 + $0x60] sm:$0xff] }
  0x6b   :  { %997 = vmatpush1.msra.mxu0 %v827_v33  ;;  %1068 = vmatpush1.msra.mxu1 %v923_v34  ;;  %v896_v6 = vld [vmem:[#allocation10 + $0x378] sm:$0xff]  ;;  %v894_v8 = vld [vmem:[#allocation10 + $0x368] sm:$0xff]  ;;  %v893_v10 = vld [vmem:[#allocation10 + $0x360] sm:$0xff] }
  0x6c   :  { %998 = vmatprep.subr.mxu0 %v825_v35  ;;  %1069 = vmatprep.subr.mxu1 %v921_v36  ;;  %v795_v11 = vld [vmem:[#allocation10 + $0x50] sm:$0xff]  ;;  %v794_v13 = vld [vmem:[#allocation10 + $0x48] sm:$0xff]  ;;  %v792_v15 = vld [vmem:[#allocation10 + $0x38] sm:$0xff] }
  0x6d   :  { %999 = vmatpush1.msra.mxu0 %v824_v37  ;;  %1070 = vmatpush1.msra.mxu1 %v920_v38  ;;  %v891_v12 = vld [vmem:[#allocation10 + $0x350] sm:$0xff]  ;;  %v890_v14 = vld [vmem:[#allocation10 + $0x348] sm:$0xff]  ;;  %v888_v16 = vld [vmem:[#allocation10 + $0x338] sm:$0xff] }
  0x6e   :  { %1000 = vmatprep.subr.mxu0 %v822_v39  ;;  %1071 = vmatprep.subr.mxu1 %v918_v40  ;;  %v791_v17 = vld [vmem:[#allocation10 + $0x30] sm:$0xff]  ;;  %v789_v19 = vld [vmem:[#allocation10 + $0x20] sm:$0xff]  ;;  %v788_v21 = vld [vmem:[#allocation10 + $0x18] sm:$0xff] }
  0x6f   :  { %1001 = vmatpush1.msra.mxu0 %v821_v41  ;;  %1072 = vmatpush1.msra.mxu1 %v917_v42  ;;  %v887_v18 = vld [vmem:[#allocation10 + $0x330] sm:$0xff]  ;;  %v885_v20 = vld [vmem:[#allocation10 + $0x320] sm:$0xff]  ;;  %v884_v22 = vld [vmem:[#allocation10 + $0x318] sm:$0xff] }
  0x70   :  { %1002 = vmatprep.subr.mxu0 %v819_v43  ;;  %1073 = vmatprep.subr.mxu1 %v915_v44  ;;  %v786_v23 = vld [vmem:[#allocation10 + $0x8] sm:$0xff]  ;;  %v785_v25 = vld [vmem:[#allocation10] sm:$0xff]  ;;  %v879_v27 = vld [vmem:[#allocation10 + $0x2f0] sm:$0xff] }
  0x71   :  { %1003 = vmatpush1.msra.mxu0 %v818_v45  ;;  %1074 = vmatpush1.msra.mxu1 %v914_v46  ;;  %v882_v24 = vld [vmem:[#allocation10 + $0x308] sm:$0xff]  ;;  %v881_v26 = vld [vmem:[#allocation10 + $0x300] sm:$0xff]  ;;  %v975_v28 = vld [vmem:[#allocation10 + $0x5f0] sm:$0xff] }
  0x72   :  { %1004 = vmatprep.subr.mxu0 %v816_v47  ;;  %1075 = vmatprep.subr.mxu1 %v912_v48  ;;  %v878_v29 = vld [vmem:[#allocation10 + $0x2e8] sm:$0xff]  ;;  %v876_v31 = vld [vmem:[#allocation10 + $0x2d8] sm:$0xff]  ;;  %v875_v33 = vld [vmem:[#allocation10 + $0x2d0] sm:$0xff] }
  0x73   :  { %1005 = vmatpush1.msra.mxu0 %v815_v49  ;;  %1076 = vmatpush1.msra.mxu1 %v911_v50  ;;  %v974_v30 = vld [vmem:[#allocation10 + $0x5e8] sm:$0xff]  ;;  %v972_v32 = vld [vmem:[#allocation10 + $0x5d8] sm:$0xff]  ;;  %v971_v34 = vld [vmem:[#allocation10 + $0x5d0] sm:$0xff] }
  0x74   :  { %1006 = vmatprep.subr.mxu0 %v813_v51  ;;  %1077 = vmatprep.subr.mxu1 %v909_v52  ;;  %v873_v35 = vld [vmem:[#allocation10 + $0x2c0] sm:$0xff]  ;;  %v872_v37 = vld [vmem:[#allocation10 + $0x2b8] sm:$0xff]  ;;  %v870_v39 = vld [vmem:[#allocation10 + $0x2a8] sm:$0xff] }
  0x75   :  { %1007 = vmatpush1.msra.mxu0 %v812_v53  ;;  %1078 = vmatpush1.msra.mxu1 %v908_v54  ;;  %v969_v36 = vld [vmem:[#allocation10 + $0x5c0] sm:$0xff]  ;;  %v968_v38 = vld [vmem:[#allocation10 + $0x5b8] sm:$0xff]  ;;  %v966_v40 = vld [vmem:[#allocation10 + $0x5a8] sm:$0xff] }
  0x76   :  { %1008 = vmatprep.subr.mxu0 %v810_v55  ;;  %1079 = vmatprep.subr.mxu1 %v906_v56  ;;  %v869_v41 = vld [vmem:[#allocation10 + $0x2a0] sm:$0xff]  ;;  %v867_v43 = vld [vmem:[#allocation10 + $0x290] sm:$0xff]  ;;  %v866_v45 = vld [vmem:[#allocation10 + $0x288] sm:$0xff] }
  0x77   :  { %1009 = vmatpush1.msra.mxu0 %v809_v57  ;;  %1080 = vmatpush1.msra.mxu1 %v905_v58  ;;  %v965_v42 = vld [vmem:[#allocation10 + $0x5a0] sm:$0xff]  ;;  %v963_v44 = vld [vmem:[#allocation10 + $0x590] sm:$0xff]  ;;  %v962_v46 = vld [vmem:[#allocation10 + $0x588] sm:$0xff] }
  0x78   :  { %1010 = vmatprep.subr.mxu0 %v807_v59  ;;  %1081 = vmatprep.subr.mxu1 %v903_v60  ;;  %v864_v47 = vld [vmem:[#allocation10 + $0x278] sm:$0xff]  ;;  %v863_v49 = vld [vmem:[#allocation10 + $0x270] sm:$0xff]  ;;  %v861_v51 = vld [vmem:[#allocation10 + $0x260] sm:$0xff] }
  0x79   :  { %1011 = vmatpush1.msra.mxu0 %v806_v61  ;;  %1082 = vmatpush1.msra.mxu1 %v902_v62  ;;  %v960_v48 = vld [vmem:[#allocation10 + $0x578] sm:$0xff]  ;;  %v959_v50 = vld [vmem:[#allocation10 + $0x570] sm:$0xff]  ;;  %v957_v52 = vld [vmem:[#allocation10 + $0x560] sm:$0xff] }
  0x7a   :  { %1012 = vmatprep.subr.mxu0 %v804_v63  ;;  %1083 = vmatprep.subr.mxu1 %v900_v0  ;;  %v860_v53 = vld [vmem:[#allocation10 + $0x258] sm:$0xff]  ;;  %v858_v55 = vld [vmem:[#allocation10 + $0x248] sm:$0xff]  ;;  %v857_v57 = vld [vmem:[#allocation10 + $0x240] sm:$0xff] }
  0x7b   :  { %1013 = vmatpush1.msra.mxu0 %v803_v1  ;;  %1084 = vmatpush1.msra.mxu1 %v899_v2  ;;  %v956_v54 = vld [vmem:[#allocation10 + $0x558] sm:$0xff]  ;;  %v954_v56 = vld [vmem:[#allocation10 + $0x548] sm:$0xff]  ;;  %v953_v58 = vld [vmem:[#allocation10 + $0x540] sm:$0xff] }
  0x7c   :  { %1014 = vmatprep.subr.mxu0 %v801_v3  ;;  %1085 = vmatprep.subr.mxu1 %v897_v4  ;;  %v855_v59 = vld [vmem:[#allocation10 + $0x230] sm:$0xff]  ;;  %v854_v61 = vld [vmem:[#allocation10 + $0x228] sm:$0xff]  ;;  %v852_v63 = vld [vmem:[#allocation10 + $0x218] sm:$0xff] }
  0x7d   :  { %1015 = vmatpush1.msra.mxu0 %v800_v5  ;;  %1086 = vmatpush1.msra.mxu1 %v896_v6  ;;  %v951_v60 = vld [vmem:[#allocation10 + $0x530] sm:$0xff]  ;;  %v950_v62 = vld [vmem:[#allocation10 + $0x528] sm:$0xff]  ;;  %v948_v0 = vld [vmem:[#allocation10 + $0x518] sm:$0xff] }
  0x7e   :  { %1016 = vmatprep.subr.mxu0 %v798_v7  ;;  %1087 = vmatprep.subr.mxu1 %v894_v8  ;;  %v851_v1 = vld [vmem:[#allocation10 + $0x210] sm:$0xff]  ;;  %v849_v3 = vld [vmem:[#allocation10 + $0x200] sm:$0xff]  ;;  %v848_v5 = vld [vmem:[#allocation10 + $0x1f8] sm:$0xff] }
  0x7f   :  { %1017 = vmatpush1.msra.mxu0 %v797_v9  ;;  %1088 = vmatpush1.msra.mxu1 %v893_v10  ;;  %v947_v2 = vld [vmem:[#allocation10 + $0x510] sm:$0xff]  ;;  %v945_v4 = vld [vmem:[#allocation10 + $0x500] sm:$0xff]  ;;  %v944_v6 = vld [vmem:[#allocation10 + $0x4f8] sm:$0xff]  ;;  %v729_v9 = vlaneseq }
  0x80   :  { %1018 = vmatprep.subr.mxu0 %v795_v11  ;;  %1089 = vmatprep.subr.mxu1 %v891_v12  ;;  %v846_v7 = vld [vmem:[#allocation10 + $0x1e8] sm:$0xff]  ;;  %v845_v10 = vld [vmem:[#allocation10 + $0x1e0] sm:$0xff]  ;;  %v843_v12 = vld [vmem:[#allocation10 + $0x1d0] sm:$0xff] }
  0x81   :  { %1019 = vmatpush1.msra.mxu0 %v794_v13  ;;  %1090 = vmatpush1.msra.mxu1 %v890_v14  ;;  %v942_v8 = vld [vmem:[#allocation10 + $0x4e8] sm:$0xff]  ;;  %v941_v11 = vld [vmem:[#allocation10 + $0x4e0] sm:$0xff]  ;;  %v939_v13 = vld [vmem:[#allocation10 + $0x4d0] sm:$0xff]  ;;  %v2268_v14 = vshrl.u32 %v729_v9, 7 }
  0x82   :  { %1020 = vmatprep.subr.mxu0 %v792_v15  ;;  %1091 = vmatprep.subr.mxu1 %v888_v16  ;;  %v842_v15 = vld [vmem:[#allocation10 + $0x1c8] sm:$0xff] }
  0x83   :  { %1021 = vmatpush1.msra.mxu0 %v791_v17  ;;  %1092 = vmatpush1.msra.mxu1 %v887_v18  ;;  %v938_v16 = vld [vmem:[#allocation10 + $0x4c8] sm:$0xff]  ;;  %v840_v17 = vld [vmem:[#allocation10 + $0x1b8] sm:$0xff] }
  0x84   :  { %1022 = vmatprep.subr.mxu0 %v789_v19  ;;  %1093 = vmatprep.subr.mxu1 %v885_v20  ;;  %v936_v18 = vld [vmem:[#allocation10 + $0x4b8] sm:$0xff]  ;;  %v747_v19 = vsub.s32 4, %v2268_v14  ;;  %v755_v20 = vsub.s32 6, %v2268_v14 }
  0x85   :  { %1023 = vmatpush1.msra.mxu0 %v788_v21  ;;  %1094 = vmatpush1.msra.mxu1 %v884_v22  ;;  %v839_v21 = vld [vmem:[#allocation10 + $0x1b0] sm:$0xff] }
  0x86   :  { %1024 = vmatprep.subr.mxu0 %v786_v23  ;;  %1095 = vmatprep.subr.mxu1 %v882_v24  ;;  %v935_v22 = vld [vmem:[#allocation10 + $0x4b0] sm:$0xff]  ;;  %v2272_v23 = vld [vmem:[#allocation9] sm:$0xff]  ;;  %v837_v24 = vld [vmem:[#allocation10 + $0x1a0] sm:$0xff] }
  0x87   :  { %1025 = vmatpush1.msra.mxu0 %v785_v25  ;;  %1096 = vmatpush1.msra.mxu1 %v881_v26  ;;  %v933_v25 = vld [vmem:[#allocation10 + $0x4a0] sm:$0xff]  ;;  %v748_v26 = vrot.slane %v2272_v23, %v747_v19  ;;  %v826_v19 = vld [vmem:[#allocation10 + $0x148] sm:$0xff] }
  0x88   :  { %1026 = vmatprep.subr.mxu0 %v879_v27  ;;  %1097 = vmatprep.subr.mxu1 %v975_v28  ;;  %v756_v27 = vrot.slane %v2272_v23, %v755_v20  ;;  %v836_v28 = vld [vmem:[#allocation10 + $0x198] sm:$0xff]  ;;  %v922_v20 = vld [vmem:[#allocation10 + $0x448] sm:$0xff] }
  0x89   :  { %1027 = vmatpush2.msra.mxu0 %v878_v29  ;;  %1098 = vmatpush2.msra.mxu1 %v974_v30  ;;  %v932_v29 = vld [vmem:[#allocation10 + $0x498] sm:$0xff]  ;;  %v834_v30 = vld [vmem:[#allocation10 + $0x188] sm:$0xff] }
  0x8a   :  { %1028 = vmatprep.subr.mxu0 %v876_v31  ;;  %1099 = vmatprep.subr.mxu1 %v972_v32  ;;  %v930_v31 = vld [vmem:[#allocation10 + $0x488] sm:$0xff]  ;;  %v833_v32 = vld [vmem:[#allocation10 + $0x180] sm:$0xff] }
  0x8b   :  { %1029 = vmatpush2.msra.mxu0 %v875_v33  ;;  %1100 = vmatpush2.msra.mxu1 %v971_v34  ;;  %v929_v33 = vld [vmem:[#allocation10 + $0x480] sm:$0xff]  ;;  %v880_v34 = vld [vmem:[#allocation10 + $0x2f8] sm:$0xff] }
  0x8c   :  { %1030 = vmatprep.subr.mxu0 %v873_v35  ;;  %1101 = vmatprep.subr.mxu1 %v969_v36  ;;  %v976_v35 = vld [vmem:[#allocation10 + $0x5f8] sm:$0xff] }
  0x8d   :  { %1031 = vmatpush2.msra.mxu0 %v872_v37  ;;  %1102 = vmatpush2.msra.mxu1 %v968_v38 }
  0x8e   :  { %1032 = vmatprep.subr.mxu0 %v870_v39  ;;  %1103 = vmatprep.subr.mxu1 %v966_v40 }
  0x8f   :  { %1033 = vmatpush2.msra.mxu0 %v869_v41  ;;  %1104 = vmatpush2.msra.mxu1 %v965_v42 }
  0x90   :  { %1034 = vmatprep.subr.mxu0 %v867_v43  ;;  %1105 = vmatprep.subr.mxu1 %v963_v44  ;;  %v2281_v44 = vsub.s32 0, %v2268_v14 }
  0x91   :  { %1035 = vmatpush2.msra.mxu0 %v866_v45  ;;  %1106 = vmatpush2.msra.mxu1 %v962_v46  ;;  %v2284_v45 = vsub.s32 2, %v2268_v14  ;;  %v2287_v46 = vsub.s32 1, %v2268_v14 }
  0x92   :  { %1036 = vmatprep.subr.mxu0 %v864_v47  ;;  %1107 = vmatprep.subr.mxu1 %v960_v48  ;;  %v743_v47 = vsub.s32 3, %v2268_v14 }
  0x93   :  { %1037 = vmatpush2.msra.mxu0 %v863_v49  ;;  %1108 = vmatpush2.msra.mxu1 %v959_v50  ;;  %v732_v49 = vrot.slane %v2272_v23, %v2281_v44 }
  0x94   :  { %1038 = vmatprep.subr.mxu0 %v861_v51  ;;  %1109 = vmatprep.subr.mxu1 %v957_v52  ;;  %v740_v51 = vrot.slane %v2272_v23, %v2284_v45 }
  0x95   :  { %1039 = vmatpush2.msra.mxu0 %v860_v53  ;;  %1110 = vmatpush2.msra.mxu1 %v956_v54  ;;  %v736_v54 = vrot.slane %v2272_v23, %v2287_v46 }
  0x96   :  { %1040 = vmatprep.subr.mxu0 %v858_v55  ;;  %1111 = vmatprep.subr.mxu1 %v954_v56  ;;  %v744_v55 = vrot.slane %v2272_v23, %v743_v47  ;;  %v856_v47 = vld [vmem:[#allocation10 + $0x238] sm:$0xff] }
  0x97   :  { %1041 = vmatpush2.msra.mxu0 %v857_v57  ;;  %1112 = vmatpush2.msra.mxu1 %v953_v58 }
  0x98   :  { %1042 = vmatprep.subr.mxu0 %v855_v59  ;;  %1113 = vmatprep.subr.mxu1 %v951_v60 }
  0x99   :  { %1043 = vmatpush2.msra.mxu0 %v854_v61  ;;  %1114 = vmatpush2.msra.mxu1 %v950_v62 }
  0x9a   :  { %1044 = vmatprep.subr.mxu0 %v852_v63  ;;  %1115 = vmatprep.subr.mxu1 %v948_v0 }
  0x9b   :  { %1045 = vmatpush2.msra.mxu0 %v851_v1  ;;  %1116 = vmatpush2.msra.mxu1 %v947_v2 }
  0x9c   :  { %1046 = vmatprep.subr.mxu0 %v849_v3  ;;  %1117 = vmatprep.subr.mxu1 %v945_v4 }
  0x9d   :  { %1047 = vmatpush2.msra.mxu0 %v848_v5  ;;  %1118 = vmatpush2.msra.mxu1 %v944_v6 }
  0x9e   :  { %1048 = vmatprep.subr.mxu0 %v846_v7  ;;  %1119 = vmatprep.subr.mxu1 %v942_v8  ;;  %v832_v7 = vld [vmem:[#allocation10 + $0x178] sm:$0xff] }
  0x9f   :  { %1049 = vmatpush2.msra.mxu0 %v845_v10  ;;  %1120 = vmatpush2.msra.mxu1 %v941_v11  ;;  %v928_v11 = vld [vmem:[#allocation10 + $0x478] sm:$0xff] }
  0xa0   :  { %1050 = vmatprep.subr.mxu0 %v843_v12  ;;  %1121 = vmatprep.subr.mxu1 %v939_v13  ;;  %v877_v12 = vld [vmem:[#allocation10 + $0x2e0] sm:$0xff] }
  0xa1   :  { %1051 = vmatpush2.msra.mxu0 %v842_v15  ;;  %1122 = vmatpush2.msra.mxu1 %v938_v16  ;;  %v973_v13 = vld [vmem:[#allocation10 + $0x5e0] sm:$0xff] }
  0xa2   :  { %1052 = vmatprep.subr.mxu0 %v840_v17  ;;  %1123 = vmatprep.subr.mxu1 %v936_v18  ;;  %v829_v15 = vld [vmem:[#allocation10 + $0x160] sm:$0xff]  ;;  %v874_v17 = vld [vmem:[#allocation10 + $0x2c8] sm:$0xff] }
  0xa3   :  { %1053 = vmatpush2.msra.mxu0 %v839_v21  ;;  %1124 = vmatpush2.msra.mxu1 %v935_v22  ;;  %v925_v16 = vld [vmem:[#allocation10 + $0x460] sm:$0xff]  ;;  %v970_v18 = vld [vmem:[#allocation10 + $0x5c8] sm:$0xff]  ;;  %v871_v21 = vld [vmem:[#allocation10 + $0x2b0] sm:$0xff] }
  0xa4   :  { %1054 = vmatprep.subr.mxu0 %v837_v24  ;;  %1125 = vmatprep.subr.mxu1 %v933_v25  ;;  %v967_v22 = vld [vmem:[#allocation10 + $0x5b0] sm:$0xff] }
  0xa5   :  { %1055 = vmatpush2.msra.mxu0 %v836_v28  ;;  %1126 = vmatpush2.msra.mxu1 %v932_v29  ;;  %v823_v24 = vld [vmem:[#allocation10 + $0x130] sm:$0xff]  ;;  %v820_v28 = vld [vmem:[#allocation10 + $0x118] sm:$0xff] }
  0xa6   :  { %1056 = vmatprep.subr.mxu0 %v834_v30  ;;  %1127 = vmatprep.subr.mxu1 %v930_v31  ;;  %v919_v25 = vld [vmem:[#allocation10 + $0x430] sm:$0xff]  ;;  %v916_v29 = vld [vmem:[#allocation10 + $0x418] sm:$0xff]  ;;  %v865_v30 = vld [vmem:[#allocation10 + $0x280] sm:$0xff] }
  0xa7   :  { %1057 = vmatpush2.msra.mxu0 %v833_v32  ;;  %1128 = vmatpush2.msra.mxu1 %v929_v33  ;;  %v961_v31 = vld [vmem:[#allocation10 + $0x580] sm:$0xff] }
  0xa8   :  { %1853 = vmatprep.subr.mxu0 %v880_v34  ;;  %1888 = vmatprep.subr.mxu1 %v976_v35  ;;  %v817_v32 = vld [vmem:[#allocation10 + $0x100] sm:$0xff]  ;;  %v862_v34 = vld [vmem:[#allocation10 + $0x268] sm:$0xff] }
  0xa9   :  { %v913_v33 = vld [vmem:[#allocation10 + $0x400] sm:$0xff]  ;;  %v958_v35 = vld [vmem:[#allocation10 + $0x568] sm:$0xff] }
 0x117   :  { %v221_v36 = vpop.f32.mrf.mxu0  ;;  %v292_v37 = vpop.f32.mrf.mxu1 }
 0x119   :  { %v223_v38 = vpop.f32.mrf.mxu0  ;;  %v294_v39 = vpop.f32.mrf.mxu1 }
 0x11b   :  { %v363_v40 = vpop.f32.mrf.mxu0  ;;  %v434_v41 = vpop.f32.mrf.mxu1 }
 0x11d   :  { %v2276_v42 = vpop.f32.mrf.mxu0  ;;  %v2278_v43 = vpop.f32.mrf.mxu1 }
 0x121   :  { %v509_v48 = vpop.f32.mrf.mxu0  ;;  %v580_v50 = vpop.f32.mrf.mxu1 }
 0x122   :  { %v510_v52 = vadd.f32 %v509_v48, %v221_v36  ;;  %v581_v53 = vadd.f32 %v580_v50, %v292_v37  ;;  %v814_v36 = vld [vmem:[#allocation10 + $0xe8] sm:$0xff]  ;;  %v952_v48 = vld [vmem:[#allocation10 + $0x538] sm:$0xff] }
 0x123   :  { %v511_v56 = vpop.f32.mrf.mxu0  ;;  %v582_v57 = vpop.f32.mrf.mxu1  ;;  %v910_v37 = vld [vmem:[#allocation10 + $0x3e8] sm:$0xff]  ;;  %v904_v50 = vld [vmem:[#allocation10 + $0x3b8] sm:$0xff] }
 0x124   :  { %v512_v58 = vadd.f32 %v511_v56, %v223_v38  ;;  %v583_v59 = vadd.f32 %v582_v57, %v294_v39  ;;  %v2297_v60 = vadd.f32 %v732_v49, %v510_v52  ;;  %v2299_v61 = vadd.f32 %v740_v51, %v581_v53  ;;  %v859_v38 = vld [vmem:[#allocation10 + $0x250] sm:$0xff]  ;;  %v808_v49 = vld [vmem:[#allocation10 + $0xb8] sm:$0xff]  ;;  %v853_v51 = vld [vmem:[#allocation10 + $0x220] sm:$0xff] }
 0x125   :  { %v955_v39 = vld [vmem:[#allocation10 + $0x550] sm:$0xff]  ;;  %v949_v52 = vld [vmem:[#allocation10 + $0x520] sm:$0xff]  ;;  %v946_v56 = vld [vmem:[#allocation10 + $0x508] sm:$0xff] }
 0x126   :  { %v770_v62 = vadd.f32 %v736_v54, %v512_v58  ;;  %v772_v63 = vadd.f32 %v744_v55, %v583_v59  ;;  %v777_v6 = vmax.f32 %v2297_v60, 0.0  ;;  %v779_v8 = vmax.f32 %v2299_v61, 0.0  ;;  %v805_v53 = vld [vmem:[#allocation10 + $0xa0] sm:$0xff]  ;;  %v850_v55 = vld [vmem:[#allocation10 + $0x208] sm:$0xff]  ;;  %v847_v59 = vld [vmem:[#allocation10 + $0x1f0] sm:$0xff] }
 0x127   :  { %v651_v0 = vpop.f32.mrf.mxu0  ;;  %v722_v1 = vpop.f32.mrf.mxu1  ;;  %v901_v54 = vld [vmem:[#allocation10 + $0x3a0] sm:$0xff]  ;;  %v802_v57 = vld [vmem:[#allocation10 + $0x88] sm:$0xff]  ;;  %v1417_v60 = vld [vmem:[#allocation12 + $0x450] sm:$0xff] }
 0x128   :  { %v778_v2 = vmax.f32 %v770_v62, 0.0  ;;  %v780_v3 = vmax.f32 %v772_v63, 0.0  ;;  %v652_v4 = vadd.f32 %v651_v0, %v363_v40  ;;  %v723_v5 = vadd.f32 %v722_v1, %v434_v41  ;;  %v811_v40 = vld [vmem:[#allocation10 + $0xd0] sm:$0xff]  ;;  %v898_v58 = vld [vmem:[#allocation10 + $0x388] sm:$0xff]  ;;  %v1415_v61 = vld [vmem:[#allocation12 + $0x440] sm:$0xff] }
 0x129   :  { %v907_v41 = vld [vmem:[#allocation10 + $0x3d0] sm:$0xff]  ;;  %v751_v0 = vsub.s32 5, %v2268_v14 }
 0x12a   :  { %v2303_v9 = vadd.f32 %v748_v26, %v652_v4  ;;  %v2305_v10 = vadd.f32 %v756_v27, %v723_v5  ;;  %1058 = vmatprep.mubr.f32.mxu0 %v778_v2  ;;  %1129 = vmatprep.mubr.f32.mxu1 %v780_v3  ;;  %v868_v26 = vld [vmem:[#allocation10 + $0x298] sm:$0xff]  ;;  %v943_v62 = vld [vmem:[#allocation10 + $0x4f0] sm:$0xff]  ;;  %v759_v4 = vsub.s32 7, %v2268_v14  ;;  %v889_v14 = vld [vmem:[#allocation10 + $0x340] sm:$0xff] }
 0x12b   :  { %1059 = vmatmul.mubr.f32.vlgmr.msra.gmra.mxu0 %v777_v6  ;;  %1130 = vmatmul.mubr.f32.vlgmr.msra.gmra.mxu1 %v779_v8  ;;  %v964_v27 = vld [vmem:[#allocation10 + $0x598] sm:$0xff]  ;;  %v799_v63 = vld [vmem:[#allocation10 + $0x70] sm:$0xff] }
 0x12c   :  { %1854 = vmatpush3.msra.mxu0 %v832_v7  ;;  %1889 = vmatpush3.msra.mxu1 %v928_v11  ;;  %v895_v1 = vld [vmem:[#allocation10 + $0x370] sm:$0xff]  ;;  %v940_v5 = vld [vmem:[#allocation10 + $0x4d8] sm:$0xff]  ;;  %v724_v11 = vpop.f32.mrf.mxu1 }
 0x12d   :  { %1855 = vmatprep.subr.mxu0 %v877_v12  ;;  %1200 = vmatprep.mubr.f32.mxu0 %v778_v2  ;;  %v844_v2 = vld [vmem:[#allocation10 + $0x1d8] sm:$0xff] }
 0x12e   :  { %1890 = vmatprep.subr.mxu1 %v973_v13  ;;  %1270 = vmatprep.mubr.f32.mxu1 %v780_v3  ;;  %v653_v3 = vpop.f32.mrf.mxu0  ;;  %v796_v7 = vld [vmem:[#allocation10 + $0x58] sm:$0xff]  ;;  %v841_v13 = vld [vmem:[#allocation10 + $0x1c0] sm:$0xff] }
 0x12f   :  { %1856 = vmatpush3.msra.mxu0 %v829_v15  ;;  %1891 = vmatpush3.msra.mxu1 %v925_v16  ;;  %v892_v12 = vld [vmem:[#allocation10 + $0x358] sm:$0xff]  ;;  %v937_v15 = vld [vmem:[#allocation10 + $0x4c0] sm:$0xff] }
 0x130   :  { %1857 = vmatprep.subr.mxu0 %v874_v17  ;;  %1892 = vmatprep.subr.mxu1 %v970_v18  ;;  %v793_v16 = vld [vmem:[#allocation10 + $0x40] sm:$0xff]  ;;  %v654_v17 = vadd.f32 %v653_v3, %v2276_v42  ;;  %v752_v18 = vrot.slane %v2272_v23, %v751_v0  ;;  %v931_v42 = vld [vmem:[#allocation10 + $0x490] sm:$0xff] }
 0x131   :  { %1858 = vmatpush3.msra.mxu0 %v826_v19  ;;  %1893 = vmatpush3.msra.mxu1 %v922_v20  ;;  %v838_v19 = vld [vmem:[#allocation10 + $0x1a8] sm:$0xff]  ;;  %v725_v20 = vadd.f32 %v724_v11, %v2278_v43  ;;  %v1303_v0 = vld [vmem:[#allocation12 + $0xc0] sm:$0xff]  ;;  %v1397_v3 = vld [vmem:[#allocation12 + $0x3b0] sm:$0xff] }
 0x132   :  { %1859 = vmatprep.subr.mxu0 %v871_v21  ;;  %1894 = vmatprep.subr.mxu1 %v967_v22  ;;  %v760_v21 = vrot.slane %v2272_v23, %v759_v4  ;;  %v934_v22 = vld [vmem:[#allocation10 + $0x4a8] sm:$0xff]  ;;  %v1325_v23 = vld [vmem:[#allocation12 + $0x170] sm:$0xff]  ;;  %v1394_v11 = vld [vmem:[#allocation12 + $0x398] sm:$0xff] }
 0x133   :  { %1860 = vmatpush3.msra.mxu0 %v823_v24  ;;  %1895 = vmatpush3.msra.mxu1 %v919_v25  ;;  %v790_v24 = vld [vmem:[#allocation10 + $0x28] sm:$0xff] }
 0x134   :  { %1861 = vmatprep.subr.mxu0 %v868_v26  ;;  %1896 = vmatprep.subr.mxu1 %v964_v27  ;;  %v886_v25 = vld [vmem:[#allocation10 + $0x328] sm:$0xff]  ;;  %v835_v26 = vld [vmem:[#allocation10 + $0x190] sm:$0xff]  ;;  %v2319_v43 = vadd.f32 %v760_v21, %v725_v20  ;;  %v1291_v20 = vld [vmem:[#allocation12 + $0x60] sm:$0xff] }
 0x135   :  { %1862 = vmatpush3.msra.mxu0 %v820_v28  ;;  %1897 = vmatpush3.msra.mxu1 %v916_v29  ;;  %v787_v27 = vld [vmem:[#allocation10 + $0x10] sm:$0xff]  ;;  %v2317_v28 = vadd.f32 %v752_v18, %v654_v17  ;;  %v1300_v4 = vld [vmem:[#allocation12 + $0xa8] sm:$0xff]  ;;  %v1294_v17 = vld [vmem:[#allocation12 + $0x78] sm:$0xff] }
 0x136   :  { %1863 = vmatprep.subr.mxu0 %v865_v30  ;;  %1898 = vmatprep.subr.mxu1 %v961_v31  ;;  %v883_v29 = vld [vmem:[#allocation10 + $0x310] sm:$0xff]  ;;  %v1324_v31 = vld [vmem:[#allocation12 + $0x168] sm:$0xff]  ;;  %v1390_v18 = vld [vmem:[#allocation12 + $0x378] sm:$0xff] }
 0x137   :  { %1864 = vmatpush3.msra.mxu0 %v817_v32  ;;  %1899 = vmatpush3.msra.mxu1 %v913_v33  ;;  %v1421_v30 = vld [vmem:[#allocation12 + $0x470] sm:$0xff]  ;;  %v1420_v32 = vld [vmem:[#allocation12 + $0x468] sm:$0xff]  ;;  %v782_v33 = vmax.f32 %v2317_v28, 0.0  ;;  %v1387_v21 = vld [vmem:[#allocation12 + $0x360] sm:$0xff] }
 0x138   :  { %1865 = vmatprep.subr.mxu0 %v862_v34  ;;  %1900 = vmatprep.subr.mxu1 %v958_v35  ;;  %v1322_v34 = vld [vmem:[#allocation12 + $0x158] sm:$0xff]  ;;  %v784_v35 = vmax.f32 %v2319_v43, 0.0  ;;  %v1413_v28 = vld [vmem:[#allocation12 + $0x430] sm:$0xff] }
 0x139   :  { %1866 = vmatpush3.msra.mxu0 %v814_v36  ;;  %1901 = vmatpush3.msra.mxu1 %v910_v37  ;;  %v1418_v36 = vld [vmem:[#allocation12 + $0x458] sm:$0xff]  ;;  %v1321_v37 = vld [vmem:[#allocation12 + $0x150] sm:$0xff] }
 0x13a   :  { %1867 = vmatprep.subr.mxu0 %v859_v38  ;;  %1902 = vmatprep.subr.mxu1 %v955_v39  ;;  %v1414_v38 = vld [vmem:[#allocation12 + $0x438] sm:$0xff]  ;;  %v1316_v39 = vld [vmem:[#allocation12 + $0x128] sm:$0xff] }
 0x13b   :  { %1868 = vmatpush3.msra.mxu0 %v811_v40  ;;  %1903 = vmatpush3.msra.mxu1 %v907_v41  ;;  %v1412_v40 = vld [vmem:[#allocation12 + $0x428] sm:$0xff]  ;;  %v1315_v41 = vld [vmem:[#allocation12 + $0x120] sm:$0xff]  ;;  %v1314_v43 = vld [vmem:[#allocation12 + $0x118] sm:$0xff] }
 0x13c   :  { %1869 = vmatprep.subr.mxu0 %v856_v47  ;;  %1904 = vmatprep.subr.mxu1 %v952_v48  ;;  %v1411_v47 = vld [vmem:[#allocation12 + $0x420] sm:$0xff]  ;;  %v1313_v48 = vld [vmem:[#allocation12 + $0x110] sm:$0xff] }
 0x13d   :  { %1870 = vmatpush3.msra.mxu0 %v808_v49  ;;  %1905 = vmatpush3.msra.mxu1 %v904_v50  ;;  %v1409_v49 = vld [vmem:[#allocation12 + $0x410] sm:$0xff]  ;;  %v1312_v50 = vld [vmem:[#allocation12 + $0x108] sm:$0xff] }
 0x13e   :  { %1871 = vmatprep.subr.mxu0 %v853_v51  ;;  %1906 = vmatprep.subr.mxu1 %v949_v52  ;;  %v1408_v51 = vld [vmem:[#allocation12 + $0x408] sm:$0xff]  ;;  %v1310_v52 = vld [vmem:[#allocation12 + $0xf8] sm:$0xff] }
 0x13f   :  { %1872 = vmatpush3.msra.mxu0 %v805_v53  ;;  %1907 = vmatpush3.msra.mxu1 %v901_v54  ;;  %v1406_v53 = vld [vmem:[#allocation12 + $0x3f8] sm:$0xff]  ;;  %v1309_v54 = vld [vmem:[#allocation12 + $0xf0] sm:$0xff] }
 0x140   :  { %1873 = vmatprep.subr.mxu0 %v850_v55  ;;  %1908 = vmatprep.subr.mxu1 %v946_v56  ;;  %v1405_v55 = vld [vmem:[#allocation12 + $0x3f0] sm:$0xff]  ;;  %v1307_v56 = vld [vmem:[#allocation12 + $0xe0] sm:$0xff] }
 0x141   :  { %1874 = vmatpush3.msra.mxu0 %v802_v57  ;;  %1909 = vmatpush3.msra.mxu1 %v898_v58  ;;  %v1403_v57 = vld [vmem:[#allocation12 + $0x3e0] sm:$0xff]  ;;  %v1306_v58 = vld [vmem:[#allocation12 + $0xd8] sm:$0xff] }
 0x142   :  { %1875 = vmatprep.subr.mxu0 %v847_v59  ;;  %1910 = vmatprep.subr.mxu1 %v943_v62  ;;  %v1402_v59 = vld [vmem:[#allocation12 + $0x3d8] sm:$0xff]  ;;  %v1304_v62 = vld [vmem:[#allocation12 + $0xc8] sm:$0xff] }
 0x143   :  { %1876 = vmatpush3.msra.mxu0 %v799_v63  ;;  %1911 = vmatpush3.msra.mxu1 %v895_v1  ;;  %v1400_v63 = vld [vmem:[#allocation12 + $0x3c8] sm:$0xff]  ;;  %v1399_v1 = vld [vmem:[#allocation12 + $0x3c0] sm:$0xff] }
 0x144   :  { %1877 = vmatprep.subr.mxu0 %v844_v2  ;;  %1912 = vmatprep.subr.mxu1 %v940_v5  ;;  %v1301_v2 = vld [vmem:[#allocation12 + $0xb0] sm:$0xff]  ;;  %v1396_v5 = vld [vmem:[#allocation12 + $0x3a8] sm:$0xff] }
 0x145   :  { %1878 = vmatpush3.msra.mxu0 %v796_v7  ;;  %1913 = vmatpush3.msra.mxu1 %v892_v12  ;;  %v1298_v7 = vld [vmem:[#allocation12 + $0x98] sm:$0xff]  ;;  %v1297_v12 = vld [vmem:[#allocation12 + $0x90] sm:$0xff] }
 0x146   :  { %1879 = vmatprep.subr.mxu0 %v841_v13  ;;  %1914 = vmatprep.subr.mxu1 %v937_v15  ;;  %v1393_v13 = vld [vmem:[#allocation12 + $0x390] sm:$0xff]  ;;  %v1295_v15 = vld [vmem:[#allocation12 + $0x80] sm:$0xff] }
 0x147   :  { %1880 = vmatpush3.msra.mxu0 %v793_v16  ;;  %1915 = vmatpush3.msra.mxu1 %v889_v14  ;;  %v1391_v16 = vld [vmem:[#allocation12 + $0x380] sm:$0xff]  ;;  %v1292_v14 = vld [vmem:[#allocation12 + $0x68] sm:$0xff] }
 0x148   :  { %1881 = vmatprep.subr.mxu0 %v838_v19  ;;  %1916 = vmatprep.subr.mxu1 %v934_v22  ;;  %v1388_v19 = vld [vmem:[#allocation12 + $0x368] sm:$0xff]  ;;  %v1289_v22 = vld [vmem:[#allocation12 + $0x50] sm:$0xff] }
 0x149   :  { %1882 = vmatpush3.msra.mxu0 %v790_v24  ;;  %1917 = vmatpush3.msra.mxu1 %v886_v25  ;;  %v1385_v24 = vld [vmem:[#allocation12 + $0x350] sm:$0xff]  ;;  %v1288_v25 = vld [vmem:[#allocation12 + $0x48] sm:$0xff] }
 0x14a   :  { %1883 = vmatprep.subr.mxu0 %v835_v26  ;;  %1918 = vmatprep.subr.mxu1 %v931_v42  ;;  %v1384_v26 = vld [vmem:[#allocation12 + $0x348] sm:$0xff]  ;;  %v1286_v42 = vld [vmem:[#allocation12 + $0x38] sm:$0xff] }
 0x14b   :  { %1884 = vmatpush3.msra.mxu0 %v787_v27  ;;  %1919 = vmatpush3.msra.mxu1 %v883_v29  ;;  %v1382_v27 = vld [vmem:[#allocation12 + $0x338] sm:$0xff]  ;;  %v1285_v29 = vld [vmem:[#allocation12 + $0x30] sm:$0xff] }
 0x14c   :  { %1201 = vmatmul.mubr.f32.vlgmr.msra.gmra.mxu0 %v777_v6  ;;  %1271 = vmatmul.mubr.f32.vlgmr.msra.gmra.mxu1 %v779_v8  ;;  %v1319_v6 = vld [vmem:[#allocation12 + $0x140] sm:$0xff]  ;;  %v1318_v8 = vld [vmem:[#allocation12 + $0x138] sm:$0xff] }
 0x14d   :  { %1488 = vmatprep.subr.mxu0 %v1325_v23  ;;  %1559 = vmatprep.subr.mxu1 %v1421_v30  ;;  %v1381_v23 = vld [vmem:[#allocation12 + $0x330] sm:$0xff]  ;;  %v1283_v30 = vld [vmem:[#allocation12 + $0x20] sm:$0xff] }
 0x14e   :  { %1489 = vmatpush1.msra.mxu0 %v1324_v31  ;;  %1552 = vmatprep.mubr.f32.mxu0 %v782_v33  ;;  %v1379_v31 = vld [vmem:[#allocation12 + $0x320] sm:$0xff] }
 0x14f   :  { %1560 = vmatpush1.msra.mxu1 %v1420_v32  ;;  %1623 = vmatprep.mubr.f32.mxu1 %v784_v35  ;;  %v1282_v32 = vld [vmem:[#allocation12 + $0x18] sm:$0xff] }
 0x150   :  { %1490 = vmatprep.subr.mxu0 %v1322_v34  ;;  %1561 = vmatprep.subr.mxu1 %v1418_v36  ;;  %v1378_v34 = vld [vmem:[#allocation12 + $0x318] sm:$0xff]  ;;  %v1280_v36 = vld [vmem:[#allocation12 + $0x8] sm:$0xff] }
 0x151   :  { %1491 = vmatpush1.msra.mxu0 %v1321_v37  ;;  %1562 = vmatpush1.msra.mxu1 %v1417_v60  ;;  %v1376_v37 = vld [vmem:[#allocation12 + $0x308] sm:$0xff]  ;;  %v1279_v60 = vld [vmem:[#allocation12] sm:$0xff] }
 0x152   :  { %1492 = vmatprep.subr.mxu0 %v1319_v6  ;;  %1563 = vmatprep.subr.mxu1 %v1415_v61  ;;  %v1375_v6 = vld [vmem:[#allocation12 + $0x300] sm:$0xff]  ;;  %v1373_v61 = vld [vmem:[#allocation12 + $0x2f0] sm:$0xff] }
 0x153   :  { %1493 = vmatpush1.msra.mxu0 %v1318_v8  ;;  %1564 = vmatpush1.msra.mxu1 %v1414_v38  ;;  %v1469_v8 = vld [vmem:[#allocation12 + $0x5f0] sm:$0xff]  ;;  %v1372_v38 = vld [vmem:[#allocation12 + $0x2e8] sm:$0xff] }
 0x154   :  { %1494 = vmatprep.subr.mxu0 %v1316_v39  ;;  %1565 = vmatprep.subr.mxu1 %v1412_v40  ;;  %v1468_v39 = vld [vmem:[#allocation12 + $0x5e8] sm:$0xff]  ;;  %v1370_v40 = vld [vmem:[#allocation12 + $0x2d8] sm:$0xff] }
 0x155   :  { %1495 = vmatpush1.msra.mxu0 %v1315_v41  ;;  %1566 = vmatpush1.msra.mxu1 %v1411_v47  ;;  %v1466_v41 = vld [vmem:[#allocation12 + $0x5d8] sm:$0xff]  ;;  %v1369_v47 = vld [vmem:[#allocation12 + $0x2d0] sm:$0xff] }
 0x156   :  { %1496 = vmatprep.subr.mxu0 %v1313_v48  ;;  %1567 = vmatprep.subr.mxu1 %v1409_v49  ;;  %v1465_v48 = vld [vmem:[#allocation12 + $0x5d0] sm:$0xff]  ;;  %v1367_v49 = vld [vmem:[#allocation12 + $0x2c0] sm:$0xff] }
 0x157   :  { %1497 = vmatpush1.msra.mxu0 %v1312_v50  ;;  %1568 = vmatpush1.msra.mxu1 %v1408_v51  ;;  %v1463_v50 = vld [vmem:[#allocation12 + $0x5c0] sm:$0xff]  ;;  %v1366_v51 = vld [vmem:[#allocation12 + $0x2b8] sm:$0xff] }
 0x158   :  { %1498 = vmatprep.subr.mxu0 %v1310_v52  ;;  %1569 = vmatprep.subr.mxu1 %v1406_v53  ;;  %v1462_v52 = vld [vmem:[#allocation12 + $0x5b8] sm:$0xff]  ;;  %v1364_v53 = vld [vmem:[#allocation12 + $0x2a8] sm:$0xff] }
 0x159   :  { %1499 = vmatpush1.msra.mxu0 %v1309_v54  ;;  %1570 = vmatpush1.msra.mxu1 %v1405_v55  ;;  %v1460_v54 = vld [vmem:[#allocation12 + $0x5a8] sm:$0xff]  ;;  %v1363_v55 = vld [vmem:[#allocation12 + $0x2a0] sm:$0xff] }
 0x15a   :  { %1500 = vmatprep.subr.mxu0 %v1307_v56  ;;  %1571 = vmatprep.subr.mxu1 %v1403_v57  ;;  %v1459_v56 = vld [vmem:[#allocation12 + $0x5a0] sm:$0xff]  ;;  %v1361_v57 = vld [vmem:[#allocation12 + $0x290] sm:$0xff] }
 0x15b   :  { %1501 = vmatpush1.msra.mxu0 %v1306_v58  ;;  %1572 = vmatpush1.msra.mxu1 %v1402_v59  ;;  %v1457_v58 = vld [vmem:[#allocation12 + $0x590] sm:$0xff]  ;;  %v1360_v59 = vld [vmem:[#allocation12 + $0x288] sm:$0xff] }
 0x15c   :  { %1502 = vmatprep.subr.mxu0 %v1304_v62  ;;  %1573 = vmatprep.subr.mxu1 %v1400_v63  ;;  %v1456_v62 = vld [vmem:[#allocation12 + $0x588] sm:$0xff]  ;;  %v1358_v63 = vld [vmem:[#allocation12 + $0x278] sm:$0xff] }
 0x15d   :  { %1503 = vmatpush1.msra.mxu0 %v1303_v0  ;;  %1574 = vmatpush1.msra.mxu1 %v1399_v1  ;;  %v1454_v0 = vld [vmem:[#allocation12 + $0x578] sm:$0xff]  ;;  %v1357_v1 = vld [vmem:[#allocation12 + $0x270] sm:$0xff] }
 0x15e   :  { %1504 = vmatprep.subr.mxu0 %v1301_v2  ;;  %1575 = vmatprep.subr.mxu1 %v1397_v3  ;;  %v1453_v2 = vld [vmem:[#allocation12 + $0x570] sm:$0xff]  ;;  %v1355_v3 = vld [vmem:[#allocation12 + $0x260] sm:$0xff] }
 0x15f   :  { %1505 = vmatpush1.msra.mxu0 %v1300_v4  ;;  %1576 = vmatpush1.msra.mxu1 %v1396_v5  ;;  %v1451_v4 = vld [vmem:[#allocation12 + $0x560] sm:$0xff]  ;;  %v1354_v5 = vld [vmem:[#allocation12 + $0x258] sm:$0xff] }
 0x160   :  { %1506 = vmatprep.subr.mxu0 %v1298_v7  ;;  %1577 = vmatprep.subr.mxu1 %v1394_v11  ;;  %v1450_v7 = vld [vmem:[#allocation12 + $0x558] sm:$0xff]  ;;  %v1352_v11 = vld [vmem:[#allocation12 + $0x248] sm:$0xff] }
 0x161   :  { %1507 = vmatpush1.msra.mxu0 %v1297_v12  ;;  %1578 = vmatpush1.msra.mxu1 %v1393_v13  ;;  %v1448_v12 = vld [vmem:[#allocation12 + $0x548] sm:$0xff]  ;;  %v1351_v13 = vld [vmem:[#allocation12 + $0x240] sm:$0xff] }
 0x162   :  { %1508 = vmatprep.subr.mxu0 %v1295_v15  ;;  %1579 = vmatprep.subr.mxu1 %v1391_v16  ;;  %v1447_v15 = vld [vmem:[#allocation12 + $0x540] sm:$0xff]  ;;  %v1349_v16 = vld [vmem:[#allocation12 + $0x230] sm:$0xff] }
 0x163   :  { %1509 = vmatpush1.msra.mxu0 %v1294_v17  ;;  %1580 = vmatpush1.msra.mxu1 %v1390_v18  ;;  %v1445_v17 = vld [vmem:[#allocation12 + $0x530] sm:$0xff]  ;;  %v1348_v18 = vld [vmem:[#allocation12 + $0x228] sm:$0xff] }
 0x164   :  { %1510 = vmatprep.subr.mxu0 %v1292_v14  ;;  %1581 = vmatprep.subr.mxu1 %v1388_v19  ;;  %v1444_v14 = vld [vmem:[#allocation12 + $0x528] sm:$0xff]  ;;  %v1346_v19 = vld [vmem:[#allocation12 + $0x218] sm:$0xff] }
 0x165   :  { %1511 = vmatpush1.msra.mxu0 %v1291_v20  ;;  %1582 = vmatpush1.msra.mxu1 %v1387_v21  ;;  %v1442_v20 = vld [vmem:[#allocation12 + $0x518] sm:$0xff]  ;;  %v1345_v21 = vld [vmem:[#allocation12 + $0x210] sm:$0xff] }
 0x166   :  { %1512 = vmatprep.subr.mxu0 %v1289_v22  ;;  %1583 = vmatprep.subr.mxu1 %v1385_v24  ;;  %v1441_v22 = vld [vmem:[#allocation12 + $0x510] sm:$0xff]  ;;  %v1343_v24 = vld [vmem:[#allocation12 + $0x200] sm:$0xff] }
 0x167   :  { %1513 = vmatpush1.msra.mxu0 %v1288_v25  ;;  %1584 = vmatpush1.msra.mxu1 %v1384_v26  ;;  %v1439_v25 = vld [vmem:[#allocation12 + $0x500] sm:$0xff]  ;;  %v1342_v26 = vld [vmem:[#allocation12 + $0x1f8] sm:$0xff] }
 0x168   :  { %1514 = vmatprep.subr.mxu0 %v1286_v42  ;;  %1585 = vmatprep.subr.mxu1 %v1382_v27  ;;  %v1438_v42 = vld [vmem:[#allocation12 + $0x4f8] sm:$0xff]  ;;  %v1340_v27 = vld [vmem:[#allocation12 + $0x1e8] sm:$0xff] }
 0x169   :  { %1515 = vmatpush1.msra.mxu0 %v1285_v29  ;;  %1586 = vmatpush1.msra.mxu1 %v1381_v23  ;;  %v1436_v29 = vld [vmem:[#allocation12 + $0x4e8] sm:$0xff]  ;;  %v1339_v23 = vld [vmem:[#allocation12 + $0x1e0] sm:$0xff] }
 0x16a   :  { %1516 = vmatprep.subr.mxu0 %v1283_v30  ;;  %1587 = vmatprep.subr.mxu1 %v1379_v31  ;;  %v1435_v30 = vld [vmem:[#allocation12 + $0x4e0] sm:$0xff]  ;;  %v1337_v31 = vld [vmem:[#allocation12 + $0x1d0] sm:$0xff] }
 0x16b   :  { %1517 = vmatpush1.msra.mxu0 %v1282_v32  ;;  %1588 = vmatpush1.msra.mxu1 %v1378_v34  ;;  %v1433_v32 = vld [vmem:[#allocation12 + $0x4d0] sm:$0xff]  ;;  %v1336_v34 = vld [vmem:[#allocation12 + $0x1c8] sm:$0xff] }
 0x16c   :  { %1518 = vmatprep.subr.mxu0 %v1280_v36  ;;  %1589 = vmatprep.subr.mxu1 %v1376_v37  ;;  %v1432_v36 = vld [vmem:[#allocation12 + $0x4c8] sm:$0xff]  ;;  %v1334_v37 = vld [vmem:[#allocation12 + $0x1b8] sm:$0xff] }
 0x16d   :  { %1519 = vmatpush1.msra.mxu0 %v1279_v60  ;;  %1590 = vmatpush1.msra.mxu1 %v1375_v6  ;;  %v1430_v60 = vld [vmem:[#allocation12 + $0x4b8] sm:$0xff]  ;;  %v1333_v6 = vld [vmem:[#allocation12 + $0x1b0] sm:$0xff] }
 0x16e   :  { %1520 = vmatprep.subr.mxu0 %v1373_v61  ;;  %1591 = vmatprep.subr.mxu1 %v1469_v8  ;;  %v1429_v61 = vld [vmem:[#allocation12 + $0x4b0] sm:$0xff]  ;;  %v1331_v8 = vld [vmem:[#allocation12 + $0x1a0] sm:$0xff] }
 0x16f   :  { %1521 = vmatpush2.msra.mxu0 %v1372_v38  ;;  %1592 = vmatpush2.msra.mxu1 %v1468_v39  ;;  %v1427_v38 = vld [vmem:[#allocation12 + $0x4a0] sm:$0xff]  ;;  %v1330_v39 = vld [vmem:[#allocation12 + $0x198] sm:$0xff] }
 0x170   :  { %1522 = vmatprep.subr.mxu0 %v1370_v40  ;;  %1593 = vmatprep.subr.mxu1 %v1466_v41  ;;  %v1426_v40 = vld [vmem:[#allocation12 + $0x498] sm:$0xff]  ;;  %v1328_v41 = vld [vmem:[#allocation12 + $0x188] sm:$0xff] }
 0x171   :  { %1523 = vmatpush2.msra.mxu0 %v1369_v47  ;;  %1594 = vmatpush2.msra.mxu1 %v1465_v48  ;;  %v1424_v47 = vld [vmem:[#allocation12 + $0x488] sm:$0xff]  ;;  %v1327_v48 = vld [vmem:[#allocation12 + $0x180] sm:$0xff] }
 0x172   :  { %1524 = vmatprep.subr.mxu0 %v1367_v49  ;;  %1595 = vmatprep.subr.mxu1 %v1463_v50  ;;  %v1423_v49 = vld [vmem:[#allocation12 + $0x480] sm:$0xff]  ;;  %v781_v50 = vmax.f32 %v2303_v9, 0.0 }
 0x173   :  { %1525 = vmatpush2.msra.mxu0 %v1366_v51  ;;  %1596 = vmatpush2.msra.mxu1 %v1462_v52  ;;  %v1374_v51 = vld [vmem:[#allocation12 + $0x2f8] sm:$0xff]  ;;  %v783_v52 = vmax.f32 %v2305_v10, 0.0 }
 0x174   :  { %1526 = vmatprep.subr.mxu0 %v1364_v53  ;;  %1597 = vmatprep.subr.mxu1 %v1460_v54  ;;  %v1470_v53 = vld [vmem:[#allocation12 + $0x5f8] sm:$0xff] }
 0x175   :  { %1527 = vmatpush2.msra.mxu0 %v1363_v55  ;;  %1598 = vmatpush2.msra.mxu1 %v1459_v56  ;;  %v1326_v54 = vld [vmem:[#allocation12 + $0x178] sm:$0xff]  ;;  %v1371_v56 = vld [vmem:[#allocation12 + $0x2e0] sm:$0xff] }
 0x176   :  { %1528 = vmatprep.subr.mxu0 %v1361_v57  ;;  %1599 = vmatprep.subr.mxu1 %v1457_v58  ;;  %v1422_v55 = vld [vmem:[#allocation12 + $0x478] sm:$0xff]  ;;  %v1467_v57 = vld [vmem:[#allocation12 + $0x5e0] sm:$0xff] }
 0x177   :  { %1529 = vmatpush2.msra.mxu0 %v1360_v59  ;;  %1600 = vmatpush2.msra.mxu1 %v1456_v62  ;;  %v1323_v58 = vld [vmem:[#allocation12 + $0x160] sm:$0xff]  ;;  %v1368_v62 = vld [vmem:[#allocation12 + $0x2c8] sm:$0xff] }
 0x178   :  { %1530 = vmatprep.subr.mxu0 %v1358_v63  ;;  %1601 = vmatprep.subr.mxu1 %v1454_v0  ;;  %v1419_v59 = vld [vmem:[#allocation12 + $0x460] sm:$0xff]  ;;  %v1464_v63 = vld [vmem:[#allocation12 + $0x5c8] sm:$0xff] }
 0x179   :  { %1531 = vmatpush2.msra.mxu0 %v1357_v1  ;;  %1602 = vmatpush2.msra.mxu1 %v1453_v2  ;;  %v1320_v0 = vld [vmem:[#allocation12 + $0x148] sm:$0xff]  ;;  %v1365_v2 = vld [vmem:[#allocation12 + $0x2b0] sm:$0xff] }
 0x17a   :  { %1532 = vmatprep.subr.mxu0 %v1355_v3  ;;  %1603 = vmatprep.subr.mxu1 %v1451_v4  ;;  %v1416_v1 = vld [vmem:[#allocation12 + $0x448] sm:$0xff]  ;;  %v1461_v3 = vld [vmem:[#allocation12 + $0x5b0] sm:$0xff] }
 0x17b   :  { %1533 = vmatpush2.msra.mxu0 %v1354_v5  ;;  %1604 = vmatpush2.msra.mxu1 %v1450_v7  ;;  %v1317_v4 = vld [vmem:[#allocation12 + $0x130] sm:$0xff]  ;;  %v1458_v5 = vld [vmem:[#allocation12 + $0x598] sm:$0xff]  ;;  %v1359_v7 = vld [vmem:[#allocation12 + $0x280] sm:$0xff] }
 0x17c   :  { %1534 = vmatprep.subr.mxu0 %v1352_v11  ;;  %1605 = vmatprep.subr.mxu1 %v1448_v12  ;;  %v1455_v11 = vld [vmem:[#allocation12 + $0x580] sm:$0xff] }
 0x17d   :  { %1535 = vmatpush2.msra.mxu0 %v1351_v13  ;;  %1606 = vmatpush2.msra.mxu1 %v1447_v15  ;;  %v1311_v12 = vld [vmem:[#allocation12 + $0x100] sm:$0xff]  ;;  %v1356_v15 = vld [vmem:[#allocation12 + $0x268] sm:$0xff] }
 0x17e   :  { %1536 = vmatprep.subr.mxu0 %v1349_v16  ;;  %1607 = vmatprep.subr.mxu1 %v1445_v17  ;;  %v1407_v13 = vld [vmem:[#allocation12 + $0x400] sm:$0xff]  ;;  %v1452_v16 = vld [vmem:[#allocation12 + $0x568] sm:$0xff] }
 0x17f   :  { %1537 = vmatpush2.msra.mxu0 %v1348_v18  ;;  %1608 = vmatpush2.msra.mxu1 %v1444_v14  ;;  %v1308_v17 = vld [vmem:[#allocation12 + $0xe8] sm:$0xff]  ;;  %v1353_v14 = vld [vmem:[#allocation12 + $0x250] sm:$0xff] }
 0x180   :  { %1538 = vmatprep.subr.mxu0 %v1346_v19  ;;  %1609 = vmatprep.subr.mxu1 %v1442_v20  ;;  %v1404_v18 = vld [vmem:[#allocation12 + $0x3e8] sm:$0xff]  ;;  %v1449_v19 = vld [vmem:[#allocation12 + $0x550] sm:$0xff] }
 0x181   :  { %1539 = vmatpush2.msra.mxu0 %v1345_v21  ;;  %1610 = vmatpush2.msra.mxu1 %v1441_v22  ;;  %v1305_v20 = vld [vmem:[#allocation12 + $0xd0] sm:$0xff]  ;;  %v1350_v22 = vld [vmem:[#allocation12 + $0x238] sm:$0xff] }
 0x182   :  { %1540 = vmatprep.subr.mxu0 %v1343_v24  ;;  %1611 = vmatprep.subr.mxu1 %v1439_v25  ;;  %v1401_v21 = vld [vmem:[#allocation12 + $0x3d0] sm:$0xff]  ;;  %v1446_v24 = vld [vmem:[#allocation12 + $0x538] sm:$0xff] }
 0x183   :  { %1541 = vmatpush2.msra.mxu0 %v1342_v26  ;;  %1612 = vmatpush2.msra.mxu1 %v1438_v42  ;;  %v1302_v25 = vld [vmem:[#allocation12 + $0xb8] sm:$0xff]  ;;  %v1347_v42 = vld [vmem:[#allocation12 + $0x220] sm:$0xff] }
 0x184   :  { %1542 = vmatprep.subr.mxu0 %v1340_v27  ;;  %1613 = vmatprep.subr.mxu1 %v1436_v29  ;;  %v1398_v26 = vld [vmem:[#allocation12 + $0x3b8] sm:$0xff]  ;;  %v1443_v27 = vld [vmem:[#allocation12 + $0x520] sm:$0xff] }
 0x185   :  { %1543 = vmatpush2.msra.mxu0 %v1339_v23  ;;  %1614 = vmatpush2.msra.mxu1 %v1435_v30  ;;  %v1299_v29 = vld [vmem:[#allocation12 + $0xa0] sm:$0xff]  ;;  %v1344_v30 = vld [vmem:[#allocation12 + $0x208] sm:$0xff] }
 0x186   :  { %1544 = vmatprep.subr.mxu0 %v1337_v31  ;;  %1615 = vmatprep.subr.mxu1 %v1433_v32  ;;  %v1395_v23 = vld [vmem:[#allocation12 + $0x3a0] sm:$0xff]  ;;  %v1440_v31 = vld [vmem:[#allocation12 + $0x508] sm:$0xff] }
 0x187   :  { %1545 = vmatpush2.msra.mxu0 %v1336_v34  ;;  %1616 = vmatpush2.msra.mxu1 %v1432_v36  ;;  %v1296_v32 = vld [vmem:[#allocation12 + $0x88] sm:$0xff]  ;;  %v1341_v36 = vld [vmem:[#allocation12 + $0x1f0] sm:$0xff] }
 0x188   :  { %1546 = vmatprep.subr.mxu0 %v1334_v37  ;;  %1617 = vmatprep.subr.mxu1 %v1430_v60  ;;  %v1392_v34 = vld [vmem:[#allocation12 + $0x388] sm:$0xff]  ;;  %v1437_v37 = vld [vmem:[#allocation12 + $0x4f0] sm:$0xff] }
 0x189   :  { %1547 = vmatpush2.msra.mxu0 %v1333_v6  ;;  %1618 = vmatpush2.msra.mxu1 %v1429_v61  ;;  %v1293_v60 = vld [vmem:[#allocation12 + $0x70] sm:$0xff]  ;;  %v1338_v61 = vld [vmem:[#allocation12 + $0x1d8] sm:$0xff] }
 0x18a   :  { %1548 = vmatprep.subr.mxu0 %v1331_v8  ;;  %1619 = vmatprep.subr.mxu1 %v1427_v38  ;;  %v1389_v6 = vld [vmem:[#allocation12 + $0x370] sm:$0xff]  ;;  %v1434_v8 = vld [vmem:[#allocation12 + $0x4d8] sm:$0xff] }
 0x18b   :  { %1549 = vmatpush2.msra.mxu0 %v1330_v39  ;;  %1620 = vmatpush2.msra.mxu1 %v1426_v40  ;;  %v1290_v38 = vld [vmem:[#allocation12 + $0x58] sm:$0xff]  ;;  %v1335_v40 = vld [vmem:[#allocation12 + $0x1c0] sm:$0xff] }
 0x18c   :  { %1550 = vmatprep.subr.mxu0 %v1328_v41  ;;  %1621 = vmatprep.subr.mxu1 %v1424_v47  ;;  %v1386_v39 = vld [vmem:[#allocation12 + $0x358] sm:$0xff]  ;;  %v1431_v41 = vld [vmem:[#allocation12 + $0x4c0] sm:$0xff] }
 0x18d   :  { %1551 = vmatpush2.msra.mxu0 %v1327_v48  ;;  %1622 = vmatpush2.msra.mxu1 %v1423_v49  ;;  %v1287_v47 = vld [vmem:[#allocation12 + $0x40] sm:$0xff]  ;;  %v1332_v49 = vld [vmem:[#allocation12 + $0x1a8] sm:$0xff] }
 0x18e   :  { %1553 = vmatmul.mubr.f32.vlgmr.msra.gmra.mxu0 %v781_v50  ;;  %1624 = vmatmul.mubr.f32.vlgmr.msra.gmra.mxu1 %v783_v52  ;;  %v1383_v48 = vld [vmem:[#allocation12 + $0x340] sm:$0xff] }
 0x18f   :  { %1923 = vmatprep.subr.mxu0 %v1374_v51  ;;  %1958 = vmatprep.subr.mxu1 %v1470_v53  ;;  %v1428_v51 = vld [vmem:[#allocation12 + $0x4a8] sm:$0xff] }
 0x190   :  { %1924 = vmatpush3.msra.mxu0 %v1326_v54  ;;  %1694 = vmatprep.mubr.f32.mxu0 %v782_v33  ;;  %v1362_v33 = vld [vmem:[#allocation12 + $0x298] sm:$0xff]  ;;  %v1284_v53 = vld [vmem:[#allocation12 + $0x28] sm:$0xff] }
 0x191   :  { %1959 = vmatpush3.msra.mxu1 %v1422_v55  ;;  %1764 = vmatprep.mubr.f32.mxu1 %v784_v35  ;;  %v1410_v35 = vld [vmem:[#allocation12 + $0x418] sm:$0xff]  ;;  %v1380_v54 = vld [vmem:[#allocation12 + $0x328] sm:$0xff]  ;;  %v1329_v55 = vld [vmem:[#allocation12 + $0x190] sm:$0xff] }
 0x192   :  { %1925 = vmatprep.subr.mxu0 %v1371_v56  ;;  %1960 = vmatprep.subr.mxu1 %v1467_v57  ;;  %v1425_v56 = vld [vmem:[#allocation12 + $0x490] sm:$0xff] }
 0x193   :  { %1926 = vmatpush3.msra.mxu0 %v1323_v58  ;;  %1961 = vmatpush3.msra.mxu1 %v1419_v59  ;;  %v1281_v57 = vld [vmem:[#allocation12 + $0x10] sm:$0xff] }
 0x194   :  { %1927 = vmatprep.subr.mxu0 %v1368_v62  ;;  %1962 = vmatprep.subr.mxu1 %v1464_v63  ;;  %v1377_v58 = vld [vmem:[#allocation12 + $0x310] sm:$0xff]  ;;  %v977_v62 = vld [vmem:[%s2381_s6] sm:$0x7] }
 0x195   :  { %1928 = vmatpush3.msra.mxu0 %v1320_v0  ;;  %1963 = vmatpush3.msra.mxu1 %v1416_v1  ;;  %v986_v63 = vrot.slane %v977_v62, %v2287_v46  ;;  %v982_v1 = vrot.slane %v977_v62, %v2281_v44  ;;  %v990_v10 = vrot.slane %v977_v62, %v2284_v45 }
 0x196   :  { %1929 = vmatprep.subr.mxu0 %v1365_v2  ;;  %1964 = vmatprep.subr.mxu1 %v1461_v3 }
 0x197   :  { %1930 = vmatpush3.msra.mxu0 %v1317_v4  ;;  %1965 = vmatpush3.msra.mxu1 %v1413_v28 }
 0x198   :  { %1931 = vmatprep.subr.mxu0 %v1362_v33  ;;  %1966 = vmatprep.subr.mxu1 %v1458_v5 }
 0x199   :  { %1932 = vmatpush3.msra.mxu0 %v1314_v43  ;;  %1967 = vmatpush3.msra.mxu1 %v1410_v35 }
 0x19a   :  { %1933 = vmatprep.subr.mxu0 %v1359_v7  ;;  %1968 = vmatprep.subr.mxu1 %v1455_v11 }
 0x19b   :  { %1934 = vmatpush3.msra.mxu0 %v1311_v12  ;;  %1969 = vmatpush3.msra.mxu1 %v1407_v13 }
 0x19c   :  { %1935 = vmatprep.subr.mxu0 %v1356_v15  ;;  %1970 = vmatprep.subr.mxu1 %v1452_v16 }
 0x19d   :  { %1936 = vmatpush3.msra.mxu0 %v1308_v17  ;;  %1971 = vmatpush3.msra.mxu1 %v1404_v18 }
 0x19e   :  { %1937 = vmatprep.subr.mxu0 %v1353_v14  ;;  %1972 = vmatprep.subr.mxu1 %v1449_v19 }
 0x19f   :  { %1938 = vmatpush3.msra.mxu0 %v1305_v20  ;;  %1973 = vmatpush3.msra.mxu1 %v1401_v21 }
 0x1a0   :  { %1939 = vmatprep.subr.mxu0 %v1350_v22  ;;  %1974 = vmatprep.subr.mxu1 %v1446_v24 }
 0x1a1   :  { %1940 = vmatpush3.msra.mxu0 %v1302_v25  ;;  %1975 = vmatpush3.msra.mxu1 %v1398_v26 }
 0x1a2   :  { %1941 = vmatprep.subr.mxu0 %v1347_v42  ;;  %1976 = vmatprep.subr.mxu1 %v1443_v27  ;;  %v1471_v42 = vld [vmem:[%s2383_s8] sm:$0x7] }
 0x1a3   :  { %1942 = vmatpush3.msra.mxu0 %v1299_v29  ;;  %1977 = vmatpush3.msra.mxu1 %v1395_v23  ;;  %v1480_v27 = vrot.slane %v1471_v42, %v2287_v46  ;;  %v1476_v23 = vrot.slane %v1471_v42, %v2281_v44 }
 0x1a4   :  { %1943 = vmatprep.subr.mxu0 %v1344_v30  ;;  %1978 = vmatprep.subr.mxu1 %v1440_v31 }
 0x1a5   :  { %1944 = vmatpush3.msra.mxu0 %v1296_v32  ;;  %1979 = vmatpush3.msra.mxu1 %v1392_v34 }
 0x1a6   :  { %1945 = vmatprep.subr.mxu0 %v1341_v36  ;;  %1980 = vmatprep.subr.mxu1 %v1437_v37 }
 0x1a7   :  { %1946 = vmatpush3.msra.mxu0 %v1293_v60  ;;  %1981 = vmatpush3.msra.mxu1 %v1389_v6 }
 0x1a8   :  { %1947 = vmatprep.subr.mxu0 %v1338_v61  ;;  %1982 = vmatprep.subr.mxu1 %v1434_v8  ;;  %v1484_v61 = vrot.slane %v1471_v42, %v2284_v45  ;;  %v1852_v8 = vld [vmem:[%s2384_s9 + $0x1] ss:$2 sm:$0x7] }
 0x1a9   :  { %1948 = vmatpush3.msra.mxu0 %v1290_v38  ;;  %1983 = vmatpush3.msra.mxu1 %v1386_v39 }
 0x1aa   :  { %1949 = vmatprep.subr.mxu0 %v1335_v40  ;;  %1984 = vmatprep.subr.mxu1 %v1431_v41  ;;  %v1815_v40 = vrot.slane %v1852_v8, %v2287_v46 }
 0x1ab   :  { %1950 = vmatpush3.msra.mxu0 %v1287_v47  ;;  %1985 = vmatpush3.msra.mxu1 %v1383_v48 }
 0x1ac   :  { %1951 = vmatprep.subr.mxu0 %v1332_v49  ;;  %1986 = vmatprep.subr.mxu1 %v1428_v51  ;;  %v1811_v49 = vrot.slane %v1852_v8, %v2281_v44 }
 0x1ad   :  { %1952 = vmatpush3.msra.mxu0 %v1284_v53  ;;  %1987 = vmatpush3.msra.mxu1 %v1380_v54 }
 0x1ae   :  { %1953 = vmatprep.subr.mxu0 %v1329_v55  ;;  %1988 = vmatprep.subr.mxu1 %v1425_v56  ;;  %v1819_v56 = vrot.slane %v1852_v8, %v2284_v45 }
 0x1af   :  { %1954 = vmatpush3.msra.mxu0 %v1281_v57  ;;  %1989 = vmatpush3.msra.mxu1 %v1377_v58 }
 0x1b0   :  { %1695 = vmatmul.mubr.f32.vlgmr.msra.gmra.mxu0 %v781_v50  ;;  %1765 = vmatmul.mubr.f32.vlgmr.msra.gmra.mxu1 %v783_v52  ;;  %v1773_v52 = vld [vmem:[%s2384_s9] ss:$2 sm:$0x7] }
 0x1b1   :  { %v1782_v7 = vrot.slane %v1773_v52, %v2287_v46  ;;  %v1778_v15 = vrot.slane %v1773_v52, %v2281_v44  ;;  %v1786_v19 = vrot.slane %v1773_v52, %v2284_v45  ;;  %v1851_v46 = vld [vmem:[%s2385_s10] ss:$0 sm:$0xff] }
 0x1eb   :  { %v1060_v59 = vpop.f32.mrf.mxu0  ;;  %v1131_v2 = vpop.f32.mrf.mxu1 }
 0x1ec   :  { %v1061_v4 = vadd.f32 %v1060_v59, %v982_v1 }
 0x1ed   :  { %v1062_v0 = vpop.f32.mrf.mxu0  ;;  %v1133_v28 = vpop.f32.mrf.mxu1 }
 0x1ee   :  { %v1063_v3 = vadd.f32 %v1062_v0, %v986_v63  ;;  %v1132_v50 = vadd.f32 %v1131_v2, %v1061_v4 }
 0x1f0   :  { %v1134_v33 = vadd.f32 %v1133_v28, %v1063_v3  ;;  %v1276_v13 = vmax.f32 %v1132_v50, 0.0 }
 0x1f2   :  { %v1277_v35 = vmax.f32 %v1134_v33, 0.0  ;;  %v1790_v20 = vmul.f32 %v1778_v15, %v1276_v13 }
 0x1f4   :  { %v1791_v18 = vmul.f32 %v1782_v7, %v1277_v35 }
 0x1f6   :  { %v1793_v24 = vadd.f32 %v1791_v18, %v1790_v20 }
 0x20c   :  { %v1885_v9 = vpop.f32.mrf.mxu0  ;;  %v1920_v5 = vpop.f32.mrf.mxu1 }
 0x20e   :  { %v1886_v43 = vpop.f32.mrf.mxu0  ;;  %v1921_v12 = vpop.f32.mrf.mxu1 }
 0x20f   :  { %v1887_v11 = vadd.f32 %v1886_v43, %v1885_v9  ;;  %v1922_v17 = vadd.f32 %v1921_v12, %v1920_v5 }
 0x211   :  { %v1203_v16 = vadd.f32 %v1887_v11, %v990_v10 }
 0x213   :  { %v1273_v14 = vadd.f32 %v1922_v17, %v1203_v16 }
 0x215   :  { %v1278_v21 = vmax.f32 %v1273_v14, 0.0 }
 0x217   :  { %v1792_v22 = vmul.f32 %v1786_v19, %v1278_v21 }
 0x219   :  { %v1794_v25 = vadd.f32 %v1793_v24, %v1792_v22 }
 0x21b   :  { %1795 = vadd.xlane.f32.xlu0 %v1794_v25 }
 0x24e   :  { %v1554_v26 = vpop.f32.mrf.mxu0  ;;  %v1625_v30 = vpop.f32.mrf.mxu1 }
 0x24f   :  { %v1555_v32 = vadd.f32 %v1554_v26, %v1476_v23 }
 0x250   :  { %v1556_v29 = vpop.f32.mrf.mxu0  ;;  %v1627_v34 = vpop.f32.mrf.mxu1 }
 0x251   :  { %v1557_v31 = vadd.f32 %v1556_v29, %v1480_v27  ;;  %v1626_v60 = vadd.f32 %v1625_v30, %v1555_v32 }
 0x253   :  { %v1628_v36 = vadd.f32 %v1627_v34, %v1557_v31  ;;  %v1770_v48 = vmax.f32 %v1626_v60, 0.0 }
 0x255   :  { %v1771_v39 = vmax.f32 %v1628_v36, 0.0  ;;  %v1823_v57 = vmul.f32 %v1811_v49, %v1770_v48 }
 0x257   :  { %v1824_v54 = vmul.f32 %v1815_v40, %v1771_v39 }
 0x259   :  { %v1826_v62 = vadd.f32 %v1824_v54, %v1823_v57 }
 0x270   :  { %v1955_v37 = vpop.f32.mrf.mxu0  ;;  %v1990_v6 = vpop.f32.mrf.mxu1 }
 0x272   :  { %v1956_v38 = vpop.f32.mrf.mxu0  ;;  %v1991_v47 = vpop.f32.mrf.mxu1 }
 0x273   :  { %v1957_v41 = vadd.f32 %v1956_v38, %v1955_v37  ;;  %v1992_v53 = vadd.f32 %v1991_v47, %v1990_v6 }
 0x275   :  { %v1697_v51 = vadd.f32 %v1957_v41, %v1484_v61 }
 0x277   :  { %v1767_v55 = vadd.f32 %v1992_v53, %v1697_v51 }
 0x279   :  { %v1772_v58 = vmax.f32 %v1767_v55, 0.0 }
 0x27b   :  { %v1825_v59 = vmul.f32 %v1819_v56, %v1772_v58 }
 0x27d   :  { %v1827_v63 = vadd.f32 %v1826_v62, %v1825_v59 }
 0x27f   :  { %1828 = vadd.xlane.f32.xlu0 %v1827_v63 }
 0x2a4   :  { %v1796_v0 = vpop.xlane.xlu0 %1795 }
 0x2a5   :  { %v1804_v44 = vadd.f32 %v1851_v46, %v1796_v0 }
 0x308   :  { %v1829_v1 = vpop.xlane.xlu0 %1828 }
 0x309   :  { %v1830_v2 = vadd.f32 %v1851_v46, %v1829_v1 }
 0x30b   :  { %v1832_v3 = vsel %vm1831_vm2, %v1804_v44, %v1830_v2 }
 0x30c   :  { %1834 = vst.msk [vmem:[%s2386_s11] sm:$0xff] %vm1833_vm3, %v1832_v3 }
 0x30d   :  { %1839 = vsyncpa [#allocation3], 1 }
 0x30e   :  { %1840 = vsyncpa [#allocation5], 1 }
 0x30f   :  { %1841 = vsyncpa [#allocation8], 1 }
 0x310   :  { %1842 = vsyncpa [#allocation11], 1 }

</bundles_post_ra>
